<compile_context>
chip_gen: v7x
topology: tpu7x:2x2x1
jax: 0.10.0
libtpu: 0.0.40
codegen_flags: <defaults>
</compile_context>

<pallas_src>
import jax
import jax.numpy as jnp
from jax.experimental import pallas as pl
from jax.experimental.pallas import tpu as pltpu


def _round_up(x, m):
    return ((x + m - 1) // m) * m


def geomgcn_forward(feature, norm, adj, weights):
    """GeomGCN forward.

    feature: [N, F] float32      node features
    norm:    [N, 1] float32      DGL-style node norm
    adj:     [D, N, N] float32   per-division dense adjacency (dst x src, 0/1)
    weights: [H, D, F, O] float32  per-(head, division) projection (feat @ W)

    Returns [N, H*D*O]  (ggcn_merge='cat', channel_merge='cat', relu).
    """
    N, F = feature.shape
    H, D, _, O = weights.shape
    HO = H * O
    OUT = H * D * O

    # Pad lanes / rows for aligned, lane-dense tiles.
    HO_pad = _round_up(HO, 128)          # aggregation output width per division
    N_pad = _round_up(N, 256)            # dst rows and src columns

    # --- host-side prep (tiny, one-time XLA ops) -----------------------------
    # Head-fused weights per division: (H, D, F, O) -> (D, F, H*O), columns
    # ordered (head, out).  Fold the SRC norm into the projected features and
    # precompute Wh once (review: hoist the projection out of the grid loop).
    w_fused = jnp.transpose(weights.astype(jnp.float32), (1, 2, 0, 3)).reshape(D, F, HO)
    xn = feature.astype(jnp.float32) * norm.astype(jnp.float32)          # (N, F)
    wh = jnp.einsum('nf,dfk->dnk', xn, w_fused)                          # (D, N, HO) f32
    wh = jnp.pad(wh, ((0, 0), (0, N_pad - N), (0, HO_pad - HO))).astype(jnp.bfloat16)

    # Exact 0/1 adjacency as int8 (halves the dominant HBM stream vs bf16).
    adj_i8 = jnp.pad(adj.astype(jnp.int8),
                     ((0, 0), (0, N_pad - N), (0, N_pad - N)))           # (D, Np, Np)
    norm_p = jnp.pad(norm.astype(jnp.float32), ((0, N_pad - N), (0, 0))) # (Np, 1)

    # --- VMEM-aware dst-row tiling -------------------------------------------
    try:
        phys_vmem = int(pltpu.get_tpu_info().vmem_capacity_bytes)
    except Exception:
        phys_vmem = 64 * 1024 * 1024     # v7x-safe fallback
    # Leave headroom for Mosaic internal scratch; cap well below physical
    # (52 MiB on v7x, 112 MiB on v5e/v6e).
    vmem_limit = int(max(min(phys_vmem - 12 * 1024 * 1024, 112 * 1024 * 1024),
                         32 * 1024 * 1024))

    resident = 2 * D * N_pad * HO_pad * 2          # Wh (default double-buffer)
    budget = vmem_limit - resident - 6 * 1024 * 1024

    cands = [c for c in (4096, 2048, 1024, 512, 256) if c <= N_pad and N_pad % c == 0]
    # Prefer >=2 grid steps so ("parallel",) actually uses both TCs on v7x.
    multi = [c for c in cands if N_pad // c >= 2] or cands
    tm = multi[-1]
    for c in multi:                                 # largest tile fitting the budget
        per_step = (2 * D * c * N_pad               # int8 adjacency, double-buffered
                    + 2 * c * D * HO_pad * 4        # f32 output, double-buffered
                    + 2 * c * 4)                    # dst-norm tile
        if per_step <= budget:
            tm = c
            break
    # TODO(synk): for very large graphs where even tm=256 (or the resident Wh)
    # overflows VMEM, add a src-column reduction grid axis with an f32
    # accumulator scratch instead of holding full src columns per step.

    grid = (N_pad // tm,)

    def kernel(wh_ref, adj_ref, norm_ref, out_ref):
        # wh_ref  : (D, N_pad, HO_pad) bf16   grid-invariant (resident in VMEM)
        # adj_ref : (D, tm, N_pad)     int8   0/1 adjacency, this dst-row tile
        # norm_ref: (tm, 1)            f32    dst norm for this row tile
        # out_ref : (tm, D*HO_pad)     f32    division-major, lane-dense slab
        nrm = norm_ref[...]
        for d in range(D):
            a_d = adj_ref[d].astype(jnp.bfloat16)                 # upcast in VMEM
            agg = jnp.dot(a_d, wh_ref[d],
                          preferred_element_type=jnp.float32)     # (tm, HO_pad)
            out_ref[:, d * HO_pad:(d + 1) * HO_pad] = jnp.maximum(agg * nrm, 0.0)

    out_padded = pl.pallas_call(
        kernel,
        out_shape=jax.ShapeDtypeStruct((N_pad, D * HO_pad), jnp.float32),
        grid_spec=pltpu.PrefetchScalarGridSpec(
            num_scalar_prefetch=0,
            grid=grid,
            in_specs=[
                pl.BlockSpec((D, N_pad, HO_pad), lambda i: (0, 0, 0)),  # Wh (resident)
                pl.BlockSpec((D, tm, N_pad), lambda i: (0, i, 0)),      # adjacency tile
                pl.BlockSpec((tm, 1), lambda i: (i, 0)),                # dst norm tile
            ],
            out_specs=pl.BlockSpec((tm, D * HO_pad), lambda i: (i, 0)),
        ),
        compiler_params=pltpu.CompilerParams(
            dimension_semantics=("parallel",),
            vmem_limit_bytes=vmem_limit),
    )(wh, adj_i8, norm_p)

    # Tiny XLA post-permute: division-major (d, h, o) -> torch 'cat' order (h, d, o),
    # dropping the lane padding and the padded dst rows.
    out = out_padded[:N].reshape(N, D, HO_pad)[:, :, :HO]        # (N, D, H*O)
    out = jnp.transpose(out.reshape(N, D, H, O), (0, 2, 1, 3)).reshape(N, OUT)
    return out


def geomgcn_reference(feature, norm, adj, weights):
    """Pure-JAX (f32) reference mirroring the torch forward."""
    H, D, _, O = weights.shape
    head_outs = []
    for h in range(H):
        div_outs = []
        for d in range(D):
            wh = (feature @ weights[h, d]) * norm
            div_outs.append(adj[d] @ wh)
        h_new = jnp.concatenate(div_outs, axis=-1) * norm
        head_outs.append(jnp.maximum(h_new, 0.0))
    return jnp.concatenate(head_outs, axis=1)


if __name__ == "__main__":
    # Small synthetic graph / model config.
    N = 16            # nodes
    F = 32            # in_feats
    O = 16            # out_feats
    D = 3             # num_divisions
    H = 2             # num_heads

    key = jax.random.PRNGKey(0)
    k_feat, k_adj, k_w = jax.random.split(key, 3)

    feature = jax.random.normal(k_feat, (N, F), dtype=jnp.float32)

    # Per-division adjacency (dst x src), deterministic random graph.
    adj = (jax.random.uniform(k_adj, (D, N, N)) < 0.25).astype(jnp.float32)

    # DGL-style norm: 1/sqrt(in_degree + 1), shape [N, 1].
    deg = jnp.sum(adj, axis=(0, 2))
    norm = (1.0 / jnp.sqrt(deg + 1.0)).reshape(N, 1).astype(jnp.float32)

    # Xavier-uniform weights per (head, division); stored as (F, O) so the
    # kernel computes feat @ W (== torch x @ W_torch.T).
    bound = jnp.sqrt(6.0 / (F + O))
    weights = jax.random.uniform(
        k_w, (H, D, F, O), minval=-bound, maxval=bound, dtype=jnp.float32)

    # TODO(synk): nn.Dropout is treated as eval-mode identity (no RNG dropout).

    out = jax.block_until_ready(geomgcn_forward(feature, norm, adj, weights))
    ref = geomgcn_reference(feature, norm, adj, weights)

    assert out.shape == (N, H * D * O)
    # Wh goes through bf16 (adjacency stays exact 0/1 int8), so compare against
    # the pure-f32 reference with a bf16-appropriate tolerance.
    assert jnp.allclose(out, ref, atol=3e-2, rtol=3e-2)

    print("KERNEL_OK")
</pallas_src>

<mosaic_0001>
module attributes {stable_mosaic.version = 11 : i64} {
  func.func @kernel(%arg0: i32, %arg1: memref<3x256x128xbf16, #tpu.memory_space<vmem>>, %arg2: memref<3x256x256xi8, #tpu.memory_space<vmem>>, %arg3: memref<256x1xf32, #tpu.memory_space<vmem>>, %arg4: memref<256x384xf32, #tpu.memory_space<vmem>>) attributes {dimension_semantics = [#tpu.dimension_semantics<parallel>], iteration_bounds = array<i64: 1>, scalar_prefetch = 0 : i64, scratch_operands = 0 : i64, tpu.core_type = #tpu.core_type<tc>, window_params = [{pipeline_mode = #tpu.pipeline_mode<synchronous>, transform_indices = @transform_0, window_bounds = array<i64: 3, 256, 128>}, {transform_indices = @transform_1, window_bounds = array<i64: 3, 256, 256>}, {transform_indices = @transform_2, window_bounds = array<i64: 256, 1>}, {transform_indices = @transform_3, window_bounds = array<i64: 256, 384>}]} {
    %c0 = arith.constant 0 : index
    %c0_0 = arith.constant 0 : index
    %0 = vector.load %arg3[%c0, %c0_0] : memref<256x1xf32, #tpu.memory_space<vmem>>, vector<256x1xf32>
    %c0_1 = arith.constant 0 : index
    %c0_2 = arith.constant 0 : index
    %c0_3 = arith.constant 0 : index
    %1 = vector.load %arg2[%c0_1, %c0_2, %c0_3] : memref<3x256x256xi8, #tpu.memory_space<vmem>>, vector<1x256x256xi8>
    %2 = vector.shape_cast %1 : vector<1x256x256xi8> to vector<256x256xi8>
    %3 = arith.sitofp %2 : vector<256x256xi8> to vector<256x256xbf16>
    %c0_4 = arith.constant 0 : index
    %c0_5 = arith.constant 0 : index
    %c0_6 = arith.constant 0 : index
    %4 = vector.load %arg1[%c0_4, %c0_5, %c0_6] : memref<3x256x128xbf16, #tpu.memory_space<vmem>>, vector<1x256x128xbf16>
    %5 = vector.shape_cast %4 : vector<1x256x128xbf16> to vector<256x128xbf16>
    %cst = arith.constant dense<0.000000e+00> : vector<256x128xf32>
    %6 = tpu.matmul %3, %5, %cst {dimension_numbers = #tpu.dot_dimension_numbers<[1], [0], [0], [1], [0, 0, 1, 1], [], []>} : vector<256x256xbf16>, vector<256x128xbf16>, vector<256x128xf32> -> vector<256x128xf32>
    %7 = vector.broadcast %0 : vector<256x1xf32> to vector<256x128xf32>
    %8 = arith.mulf %6, %7 : vector<256x128xf32>
    %cst_7 = arith.constant 0.000000e+00 : f32
    %9 = vector.broadcast %cst_7 : f32 to vector<256x128xf32>
    %10 = arith.maximumf %8, %9 : vector<256x128xf32>
    %c0_8 = arith.constant 0 : index
    %c0_9 = arith.constant 0 : index
    %11 = vector.load %arg4[%c0_8, %c0_9] : memref<256x384xf32, #tpu.memory_space<vmem>>, vector<256x128xf32>
    tpu.vector_store %arg4[%c0_8, %c0_9], %10 {strides = array<i32>} : memref<256x384xf32, #tpu.memory_space<vmem>>, vector<256x128xf32>,
    %c1 = arith.constant 1 : index
    %c0_10 = arith.constant 0 : index
    %c0_11 = arith.constant 0 : index
    %12 = vector.load %arg2[%c1, %c0_10, %c0_11] : memref<3x256x256xi8, #tpu.memory_space<vmem>>, vector<1x256x256xi8>
    %13 = vector.shape_cast %12 : vector<1x256x256xi8> to vector<256x256xi8>
    %14 = arith.sitofp %13 : vector<256x256xi8> to vector<256x256xbf16>
    %c1_12 = arith.constant 1 : index
    %c0_13 = arith.constant 0 : index
    %c0_14 = arith.constant 0 : index
    %15 = vector.load %arg1[%c1_12, %c0_13, %c0_14] : memref<3x256x128xbf16, #tpu.memory_space<vmem>>, vector<1x256x128xbf16>
    %16 = vector.shape_cast %15 : vector<1x256x128xbf16> to vector<256x128xbf16>
    %cst_15 = arith.constant dense<0.000000e+00> : vector<256x128xf32>
    %17 = tpu.matmul %14, %16, %cst_15 {dimension_numbers = #tpu.dot_dimension_numbers<[1], [0], [0], [1], [0, 0, 1, 1], [], []>} : vector<256x256xbf16>, vector<256x128xbf16>, vector<256x128xf32> -> vector<256x128xf32>
    %18 = vector.broadcast %0 : vector<256x1xf32> to vector<256x128xf32>
    %19 = arith.mulf %17, %18 : vector<256x128xf32>
    %cst_16 = arith.constant 0.000000e+00 : f32
    %20 = vector.broadcast %cst_16 : f32 to vector<256x128xf32>
    %21 = arith.maximumf %19, %20 : vector<256x128xf32>
    %c0_17 = arith.constant 0 : index
    %c128 = arith.constant 128 : index
    %22 = vector.load %arg4[%c0_17, %c128] : memref<256x384xf32, #tpu.memory_space<vmem>>, vector<256x128xf32>
    tpu.vector_store %arg4[%c0_17, %c128], %21 {strides = array<i32>} : memref<256x384xf32, #tpu.memory_space<vmem>>, vector<256x128xf32>,
    %c2 = arith.constant 2 : index
    %c0_18 = arith.constant 0 : index
    %c0_19 = arith.constant 0 : index
    %23 = vector.load %arg2[%c2, %c0_18, %c0_19] : memref<3x256x256xi8, #tpu.memory_space<vmem>>, vector<1x256x256xi8>
    %24 = vector.shape_cast %23 : vector<1x256x256xi8> to vector<256x256xi8>
    %25 = arith.sitofp %24 : vector<256x256xi8> to vector<256x256xbf16>
    %c2_20 = arith.constant 2 : index
    %c0_21 = arith.constant 0 : index
    %c0_22 = arith.constant 0 : index
    %26 = vector.load %arg1[%c2_20, %c0_21, %c0_22] : memref<3x256x128xbf16, #tpu.memory_space<vmem>>, vector<1x256x128xbf16>
    %27 = vector.shape_cast %26 : vector<1x256x128xbf16> to vector<256x128xbf16>
    %cst_23 = arith.constant dense<0.000000e+00> : vector<256x128xf32>
    %28 = tpu.matmul %25, %27, %cst_23 {dimension_numbers = #tpu.dot_dimension_numbers<[1], [0], [0], [1], [0, 0, 1, 1], [], []>} : vector<256x256xbf16>, vector<256x128xbf16>, vector<256x128xf32> -> vector<256x128xf32>
    %29 = vector.broadcast %0 : vector<256x1xf32> to vector<256x128xf32>
    %30 = arith.mulf %28, %29 : vector<256x128xf32>
    %cst_24 = arith.constant 0.000000e+00 : f32
    %31 = vector.broadcast %cst_24 : f32 to vector<256x128xf32>
    %32 = arith.maximumf %30, %31 : vector<256x128xf32>
    %c0_25 = arith.constant 0 : index
    %c256 = arith.constant 256 : index
    %33 = vector.load %arg4[%c0_25, %c256] : memref<256x384xf32, #tpu.memory_space<vmem>>, vector<256x128xf32>
    tpu.vector_store %arg4[%c0_25, %c256], %32 {strides = array<i32>} : memref<256x384xf32, #tpu.memory_space<vmem>>, vector<256x128xf32>,
    return
  }
  func.func @transform_0(%arg0: i32) -> (i32, i32, i32) {
    %c0_i32 = arith.constant 0 : i32
    %c0_i32_0 = arith.constant 0 : i32
    %c0_i32_1 = arith.constant 0 : i32
    %c0_i32_2 = arith.constant 0 : i32
    return %c0_i32, %c0_i32_0, %c0_i32_1 : i32, i32, i32
  }
  func.func @transform_1(%arg0: i32) -> (i32, i32, i32) {
    %c0_i32 = arith.constant 0 : i32
    %c0_i32_0 = arith.constant 0 : i32
    %c0_i32_1 = arith.constant 0 : i32
    return %c0_i32, %arg0, %c0_i32_0 : i32, i32, i32
  }
  func.func @transform_2(%arg0: i32) -> (i32, i32) {
    %c0_i32 = arith.constant 0 : i32
    %c0_i32_0 = arith.constant 0 : i32
    return %arg0, %c0_i32 : i32, i32
  }
  func.func @transform_3(%arg0: i32) -> (i32, i32) {
    %c0_i32 = arith.constant 0 : i32
    %c0_i32_0 = arith.constant 0 : i32
    return %arg0, %c0_i32 : i32, i32
  }
}

</mosaic_0001>

<bundles_post_ra>
// kernel: tpu_custom_call.1
= control target key start
LH: loop header
LB: loop body
LE: loop exit
PB: predicated region body
PF: predicated region fallthrough
CT: control target
= control target key end

     0   :  { %8 = vsyncpa [#allocation3], 0  ;;  %s2411_s0 = inlined_call_operand.hbm [shape: bf16[3,256,128], index: 0, kind: input, shape index: {}]   ;;  %s2412_s1 = inlined_call_operand.hbm [shape: s8[3,256,256], index: 1, kind: input, shape index: {}]   ;;  %s2413_s2 = inlined_call_operand.vmem [shape: f32[256,1], index: 2, kind: input, shape index: {}]   ;;  %s2414_s3 = inlined_call_operand.hbm [shape: f32[256,384], index: 3, kind: output, shape index: {}]  }
   0x1   :  { %9 = vsyncpa [#allocation6], 0 }
   0x2   :  { %10 = vsyncpa [#allocation4], 0  ;;  %s2089_s12 = smov [#allocation2]   ;;  %s2017_s16 = scalar_lea.hbm %s2411_s0, 6144 }
   0x3   :  { %s16_s13 = sshll.u32 %s2089_s12, 4  ;;  %p2018_p0 = scmp.ne.s32.totalorder %s2411_s0, %s2017_s16  ;;  %s17_s13 = int_to_ptr.vmem [resolvable:$true] %s16_s13 }
   0x4   :  { %p2021_p1 = scmp.lt.u32.totalorder %s2017_s16, %s2411_s0 }
   0x6   :  { %p2023_p2 = pnand %p2021_p1, %p2018_p0 }
   0x8   :  { %2026 = shalt.err (!%p2023_p2)
}
   0x9   :  { %s2027_s21 = scalar_lea.vmem %s17_s13, 6144  ;;  %p2032_p4 = scmp.lt.s32.totalorder %s17_s13, %s17_s13 }
   0xa   :  { %p2028_p3 = scmp.ne.s32.totalorder %s17_s13, %s2027_s21  ;;  %p2033_p5 = scmp.lt.s32.totalorder %s2027_s21, %s2027_s21 }
   0xc   :  { %p2034_p6 = por %p2033_p5, %p2032_p4 }
   0xe   :  { %p2035_p7 = pnand %p2034_p6, %p2028_p3 }
  0x10   :  { %2038 = shalt.err (!%p2035_p7)
}
  0x11   :  { %s2090_s22 = smov 64   ;;  %s2091_s23 = smov 4  }
  0x12   :  { %22 = dma.hbm_to_vmem [thread:$0]  %s2411_s0, 6144, %s17_s13, [#allocation3], %s2090_s22, %s2090_s22, %s2091_s23  }
  0x13   :  { %s2092_s26 = smov [#allocation5]   ;;  %s2039_s30 = scalar_lea.hbm %s2412_s1, 6144 }
  0x14   :  { %s28_s27 = sshll.u32 %s2092_s26, 4  ;;  %p2040_p8 = scmp.ne.s32.totalorder %s2412_s1, %s2039_s30  ;;  %s29_s27 = int_to_ptr.vmem [resolvable:$true] %s28_s27 }
  0x15   :  { %p2043_p9 = scmp.lt.u32.totalorder %s2039_s30, %s2412_s1 }
  0x17   :  { %p2045_p10 = pnand %p2043_p9, %p2040_p8 }
  0x19   :  { %2048 = shalt.err (!%p2045_p10)
}
  0x1a   :  { %s2049_s8 = scalar_lea.vmem %s29_s27, 6144  ;;  %p2054_p12 = scmp.lt.s32.totalorder %s29_s27, %s29_s27 }
  0x1b   :  { %p2050_p11 = scmp.ne.s32.totalorder %s29_s27, %s2049_s8  ;;  %p2055_p13 = scmp.lt.s32.totalorder %s2049_s8, %s2049_s8 }
  0x1d   :  { %p2056_p0 = por %p2055_p13, %p2054_p12 }
  0x1f   :  { %p2057_p1 = pnand %p2056_p0, %p2050_p11 }
  0x21   :  { %2060 = shalt.err (!%p2057_p1)
}
  0x22   :  { %s2093_s0 = smov 256   ;;  %s2094_s9 = smov 16  }
  0x23   :  { %34 = dma.hbm_to_vmem [thread:$0]  %s2412_s1, 6144, %s29_s27, [#allocation6], %s2093_s0, %s2093_s0, %s2094_s9  }
  0x24   :  { %2083 = dma.done.wait [#allocation3], 6144  }
  0x25   :  { %2084 = vsyncadd [#allocation3], 4294961152 }
  0x26   :  { %2085 = dma.done.wait [#allocation6], 6144  }
  0x27   :  { %2086 = vsyncadd [#allocation6], 4294961152  ;;  %v2095_v0 = vmov 0   ;;  %v1969_v1 = vld [vmem:[#allocation2 + $0x40] sm:$0xff]   ;;  %v1971_v3 = vld [vmem:[#allocation2 + $0x48] sm:$0xff]  }
  0x28   :  { %1967 = vset.pattern.permute.xlu0 %v2095_v0  ;;  %1968 = vset.pattern.permute.xlu1 %v2095_v0  ;;  %v1970_v2 = vld [vmem:[#allocation2] sm:$0xff]   ;;  %v1972_v4 = vld [vmem:[#allocation2 + $0x8] sm:$0xff]   ;;  %v1973_v5 = vld [vmem:[#allocation2 + $0x50] sm:$0xff]  }
  0x29   :  { %1605 = vmatprep.subr.bf16.mxu0 %v1969_v1  ;;  %1941 = vmatprep.subr.bf16.mxu1 %v1969_v1  ;;  %v1974_v6 = vld [vmem:[#allocation2 + $0x10] sm:$0xff]   ;;  %v1975_v7 = vld [vmem:[#allocation2 + $0x58] sm:$0xff]   ;;  %v1977_v9 = vld [vmem:[#allocation2 + $0x60] sm:$0xff]  }
  0x2a   :  { %1606 = vmatpush3.bf16.msra.mxu0 %v1970_v2  ;;  %1949 = vmatpush3.bf16.msra.mxu1 %v1970_v2  ;;  %v1976_v8 = vld [vmem:[#allocation2 + $0x18] sm:$0xff]   ;;  %v1978_v10 = vld [vmem:[#allocation2 + $0x20] sm:$0xff]   ;;  %v1979_v11 = vld [vmem:[#allocation2 + $0x68] sm:$0xff]  }
  0x2b   :  { %1607 = vmatprep.subr.bf16.mxu0 %v1971_v3  ;;  %1942 = vmatprep.subr.bf16.mxu1 %v1971_v3  ;;  %v77_v12 = vld [vmem:[#allocation5 + $0x8] sm:$0xff]  ;;  %v1981_v17 = vld [vmem:[#allocation2 + $0x70] sm:$0xff]   ;;  %v1983_v19 = vld [vmem:[#allocation2 + $0x78] sm:$0xff]  }
  0x2c   :  { %v85_v13 = vld [vmem:[#allocation5 + $0x48] sm:$0xff]  ;;  %v93_v14 = vunpack.c.l.s8.bf16 %v77_v12  ;;  %v1982_v18 = vld [vmem:[#allocation2 + $0x30] sm:$0xff]   ;;  %v1984_v20 = vld [vmem:[#allocation2 + $0x38] sm:$0xff]   ;;  %v95_v29 = vunpack.c.h.s8.bf16 %v77_v12 }
  0x2d   :  { %v109_v15 = vunpack.c.l.s8.bf16 %v85_v13  ;;  %v1980_v16 = vld [vmem:[#allocation2 + $0x28] sm:$0xff]   ;;  %v76_v21 = vld [vmem:[#allocation5] sm:$0xff]  ;;  %v111_v30 = vunpack.c.h.s8.bf16 %v85_v13  ;;  %v79_v35 = vld [vmem:[#allocation5 + $0x18] sm:$0xff] }
  0x2e   :  { %1608 = vmatpush3.bf16.msra.mxu0 %v1972_v4  ;;  %1950 = vmatpush3.bf16.msra.mxu1 %v1972_v4  ;;  %v84_v22 = vld [vmem:[#allocation5 + $0x40] sm:$0xff]  ;;  %v92_v25 = vunpack.c.l.s8.bf16 %v76_v21  ;;  %v1989_v31 = vld [vmem:[#allocation2 + $0xc8] sm:$0xff]   ;;  %v87_v36 = vld [vmem:[#allocation5 + $0x58] sm:$0xff]  ;;  %v94_v39 = vunpack.c.h.s8.bf16 %v76_v21  ;;  %v97_v42 = vunpack.c.l.s8.bf16 %v79_v35  ;;  %v99_v55 = vunpack.c.h.s8.bf16 %v79_v35 }
  0x2f   :  { %1609 = vmatprep.subr.bf16.mxu0 %v1973_v5  ;;  %1943 = vmatprep.subr.bf16.mxu1 %v1973_v5  ;;  %v1985_v23 = vld [vmem:[#allocation2 + $0xc0] sm:$0xff]   ;;  %v108_v26 = vunpack.c.l.s8.bf16 %v84_v22  ;;  %v1990_v32 = vld [vmem:[#allocation2 + $0x148] sm:$0xff]   ;;  %v1993_v37 = vld [vmem:[#allocation2 + $0xd0] sm:$0xff]   ;;  %v110_v40 = vunpack.c.h.s8.bf16 %v84_v22  ;;  %v113_v43 = vunpack.c.l.s8.bf16 %v87_v36  ;;  %v115_v56 = vunpack.c.h.s8.bf16 %v87_v36 }
  0x30   :  { %284 = vmatprep.mubr.bf16.mxu0 %v93_v14  ;;  %348 = vmatprep.mubr.bf16.mxu1 %v109_v15  ;;  %v1986_v24 = vld [vmem:[#allocation2 + $0x140] sm:$0xff]   ;;  %v1991_v33 = vld [vmem:[#allocation2 + $0x88] sm:$0xff]   ;;  %v1994_v38 = vld [vmem:[#allocation2 + $0x150] sm:$0xff]  }
  0x31   :  { %v1987_v27 = vld [vmem:[#allocation2 + $0x80] sm:$0xff]   ;;  %v1992_v34 = vld [vmem:[#allocation2 + $0x108] sm:$0xff]   ;;  %v1995_v41 = vld [vmem:[#allocation2 + $0x90] sm:$0xff]  }
  0x32   :  { %1610 = vmatpush3.bf16.msra.mxu0 %v1974_v6  ;;  %1951 = vmatpush3.bf16.msra.mxu1 %v1974_v6  ;;  %v1988_v28 = vld [vmem:[#allocation2 + $0x100] sm:$0xff]   ;;  %v1996_v44 = vld [vmem:[#allocation2 + $0x110] sm:$0xff]   ;;  %v1997_v45 = vld [vmem:[#allocation2 + $0xd8] sm:$0xff]  }
  0x33   :  { %1611 = vmatprep.subr.bf16.mxu0 %v1975_v7  ;;  %1944 = vmatprep.subr.bf16.mxu1 %v1975_v7  ;;  %v1998_v46 = vld [vmem:[#allocation2 + $0x158] sm:$0xff]   ;;  %v78_v47 = vld [vmem:[#allocation5 + $0x10] sm:$0xff]  ;;  %v2001_v51 = vld [vmem:[#allocation2 + $0xe0] sm:$0xff]  }
  0x34   :  { %v86_v48 = vld [vmem:[#allocation5 + $0x50] sm:$0xff]  ;;  %v1999_v49 = vld [vmem:[#allocation2 + $0x98] sm:$0xff]   ;;  %v2002_v52 = vld [vmem:[#allocation2 + $0x160] sm:$0xff]   ;;  %v96_v53 = vunpack.c.l.s8.bf16 %v78_v47  ;;  %v98_v5 = vunpack.c.h.s8.bf16 %v78_v47 }
  0x35   :  { %v2000_v50 = vld [vmem:[#allocation2 + $0x118] sm:$0xff]   ;;  %v112_v54 = vunpack.c.l.s8.bf16 %v86_v48  ;;  %v2003_v57 = vld [vmem:[#allocation2 + $0xa0] sm:$0xff]   ;;  %v2005_v59 = vld [vmem:[#allocation2 + $0xe8] sm:$0xff]   ;;  %v114_v6 = vunpack.c.h.s8.bf16 %v86_v48 }
  0x36   :  { %1612 = vmatpush3.bf16.msra.mxu0 %v1976_v8  ;;  %1952 = vmatpush3.bf16.msra.mxu1 %v1976_v8  ;;  %v2004_v58 = vld [vmem:[#allocation2 + $0x120] sm:$0xff]   ;;  %v2006_v60 = vld [vmem:[#allocation2 + $0x168] sm:$0xff]   ;;  %v2009_v2 = vld [vmem:[#allocation2 + $0xf0] sm:$0xff]  }
  0x37   :  { %1613 = vmatprep.subr.bf16.mxu0 %v1977_v9  ;;  %1945 = vmatprep.subr.bf16.mxu1 %v1977_v9  ;;  %v81_v61 = vld [vmem:[#allocation5 + $0x28] sm:$0xff]  ;;  %v44_v1 = vld [vmem:[%s2413_s2] sm:$0xff]  ;;  %v2010_v3 = vld [vmem:[#allocation2 + $0x170] sm:$0xff]  }
  0x38   :  { %v89_v62 = vld [vmem:[#allocation5 + $0x68] sm:$0xff]  ;;  %v46_v4 = vld [vmem:[%s2413_s2 + $0x10] sm:$0xff]  ;;  %415 = vperm.xlu0 %1967, %v44_v1   ;;  %v101_v7 = vunpack.c.l.s8.bf16 %v81_v61  ;;  %v2014_v12 = vld [vmem:[#allocation2 + $0x178] sm:$0xff]   ;;  %v103_v21 = vunpack.c.h.s8.bf16 %v81_v61 }
  0x39   :  { %v2007_v63 = vld [vmem:[#allocation2 + $0xa8] sm:$0xff]   ;;  %425 = vperm.xlu1 %1968, %v46_v4   ;;  %v117_v8 = vunpack.c.l.s8.bf16 %v89_v62  ;;  %v2011_v9 = vld [vmem:[#allocation2 + $0xb0] sm:$0xff]   ;;  %v80_v13 = vld [vmem:[#allocation5 + $0x20] sm:$0xff]  ;;  %v119_v22 = vunpack.c.h.s8.bf16 %v89_v62 }
  0x3a   :  { %1614 = vmatpush3.bf16.msra.mxu0 %v1978_v10  ;;  %1953 = vmatpush3.bf16.msra.mxu1 %v1978_v10  ;;  %v2008_v0 = vld [vmem:[#allocation2 + $0x128] sm:$0xff]   ;;  %v2012_v10 = vld [vmem:[#allocation2 + $0x130] sm:$0xff]   ;;  %v88_v14 = vld [vmem:[#allocation5 + $0x60] sm:$0xff] }
  0x3b   :  { %1615 = vmatprep.subr.bf16.mxu0 %v1979_v11  ;;  %1946 = vmatprep.subr.bf16.mxu1 %v1979_v11  ;;  %v2013_v11 = vld [vmem:[#allocation2 + $0xf8] sm:$0xff]   ;;  %v45_v15 = vld [vmem:[%s2413_s2 + $0x8] sm:$0xff]  ;;  %v82_v35 = vld [vmem:[#allocation5 + $0x30] sm:$0xff] }
  0x3c   :  { %420 = vperm.xlu0 %1967, %v45_v15   ;;  %v90_v36 = vld [vmem:[#allocation5 + $0x70] sm:$0xff]  ;;  %v59_v48 = vld [vmem:[%s2413_s2 + $0x78] sm:$0xff] }
  0x3d   :  { %v58_v47 = vld [vmem:[%s2413_s2 + $0x70] sm:$0xff]  ;;  %v673_v1 = vld [vmem:[#allocation5 + $0x98] sm:$0xff] }
  0x3e   :  { %1616 = vmatpush3.bf16.msra.mxu0 %v1980_v16  ;;  %1954 = vmatpush3.bf16.msra.mxu1 %v1980_v16  ;;  %v47_v16 = vld [vmem:[%s2413_s2 + $0x18] sm:$0xff] }
  0x3f   :  { %1617 = vmatprep.subr.bf16.mxu0 %v1981_v17  ;;  %1947 = vmatprep.subr.bf16.mxu1 %v1981_v17  ;;  %v2015_v17 = vld [vmem:[#allocation2 + $0xb8] sm:$0xff]  }
  0x40   :  { %430 = vperm.xlu1 %1968, %v47_v16   ;;  %v67_v4 = vld [vmem:[%s2413_s2 + $0xb8] sm:$0xff] }
  0x42   :  { %1618 = vmatpush3.bf16.msra.mxu0 %v1982_v18  ;;  %1955 = vmatpush3.bf16.msra.mxu1 %v1982_v18  ;;  %v2016_v18 = vld [vmem:[#allocation2 + $0x138] sm:$0xff]  }
  0x43   :  { %1619 = vmatprep.subr.bf16.mxu0 %v1983_v19  ;;  %1948 = vmatprep.subr.bf16.mxu1 %v1983_v19  ;;  %v100_v19 = vunpack.c.l.s8.bf16 %v80_v13 }
  0x46   :  { %1620 = vmatpush3.bf16.msra.mxu0 %v1984_v20  ;;  %1956 = vmatpush3.bf16.msra.mxu1 %v1984_v20  ;;  %v116_v20 = vunpack.c.l.s8.bf16 %v88_v14 }
  0x47   :  { %1717 = vmatprep.subr.bf16.mxu1 %v1985_v23  ;;  %1829 = vmatprep.subr.bf16.mxu0 %v1986_v24  ;;  %v48_v23 = vld [vmem:[%s2413_s2 + $0x20] sm:$0xff]  ;;  %v49_v24 = vld [vmem:[%s2413_s2 + $0x28] sm:$0xff] }
  0x48   :  { %435 = vperm.xlu0 %1967, %v48_v23   ;;  %440 = vperm.xlu1 %1968, %v49_v24   ;;  %v74_v23 = vld [vmem:[%s2413_s2 + $0xf0] sm:$0xff]  ;;  %v75_v24 = vld [vmem:[%s2413_s2 + $0xf8] sm:$0xff] }
  0x49   :  { %285 = vmatmul.mubr.bf16.vlgmr.msra.gmra.mrb[0].mxu0 %v92_v25  ;;  %349 = vmatmul.mubr.bf16.vlgmr.msra.gmra.mrb[0].mxu1 %v108_v26  ;;  %v83_v25 = vld [vmem:[#allocation5 + $0x38] sm:$0xff] }
  0x4a   :  { %1718 = vmatpush3.bf16.msra.mxu1 %v1987_v27  ;;  %1830 = vmatpush3.bf16.msra.mxu0 %v1988_v28  ;;  %v91_v26 = vld [vmem:[#allocation5 + $0x78] sm:$0xff]  ;;  %v50_v27 = vld [vmem:[%s2413_s2 + $0x30] sm:$0xff] }
  0x4b   :  { %292 = vmatprep.mubr.bf16.mxu0 %v95_v29  ;;  %356 = vmatprep.mubr.bf16.mxu1 %v111_v30  ;;  %v51_v28 = vld [vmem:[%s2413_s2 + $0x38] sm:$0xff]  ;;  %v102_v29 = vunpack.c.h.s8.bf16 %v80_v13  ;;  %v118_v30 = vunpack.c.h.s8.bf16 %v88_v14  ;;  %v70_v13 = vld [vmem:[%s2413_s2 + $0xd0] sm:$0xff] }
  0x4c   :  { %1719 = vmatprep.subr.bf16.mxu1 %v1989_v31  ;;  %1831 = vmatprep.subr.bf16.mxu0 %v1990_v32  ;;  %v105_v31 = vunpack.c.l.s8.bf16 %v83_v25  ;;  %v121_v32 = vunpack.c.l.s8.bf16 %v91_v26  ;;  %v71_v14 = vld [vmem:[%s2413_s2 + $0xd8] sm:$0xff] }
  0x4d   :  { %445 = vperm.xlu0 %1967, %v50_v27   ;;  %450 = vperm.xlu1 %1968, %v51_v28  }
  0x4e   :  { %1720 = vmatpush3.bf16.msra.mxu1 %v1991_v33  ;;  %1832 = vmatpush3.bf16.msra.mxu0 %v1992_v34  ;;  %v52_v33 = vld [vmem:[%s2413_s2 + $0x40] sm:$0xff]  ;;  %v53_v34 = vld [vmem:[%s2413_s2 + $0x48] sm:$0xff] }
  0x4f   :  { %1721 = vmatprep.subr.bf16.mxu1 %v1993_v37  ;;  %1833 = vmatprep.subr.bf16.mxu0 %v1994_v38  ;;  %v54_v37 = vld [vmem:[%s2413_s2 + $0x50] sm:$0xff]  ;;  %v55_v38 = vld [vmem:[%s2413_s2 + $0x58] sm:$0xff] }
  0x51   :  { %293 = vmatmul.mubr.bf16.gmra.mrb[4].mxu0 %v94_v39  ;;  %357 = vmatmul.mubr.bf16.gmra.mrb[4].mxu1 %v110_v40  ;;  %v104_v39 = vunpack.c.l.s8.bf16 %v82_v35  ;;  %v120_v40 = vunpack.c.l.s8.bf16 %v90_v36 }
  0x52   :  { %300 = vmatprep.mubr.bf16.mxu0 %v97_v42  ;;  %364 = vmatprep.mubr.bf16.mxu1 %v113_v43  ;;  %v123_v42 = vunpack.c.h.s8.bf16 %v91_v26  ;;  %v56_v43 = vld [vmem:[%s2413_s2 + $0x60] sm:$0xff] }
  0x53   :  { %1722 = vmatpush3.bf16.msra.mxu1 %v1995_v41  ;;  %1834 = vmatpush3.bf16.msra.mxu0 %v1996_v44  ;;  %v107_v41 = vunpack.c.h.s8.bf16 %v83_v25  ;;  %v57_v44 = vld [vmem:[%s2413_s2 + $0x68] sm:$0xff] }
  0x54   :  { %1723 = vmatprep.subr.bf16.mxu1 %v1997_v45  ;;  %1835 = vmatprep.subr.bf16.mxu0 %v1998_v46  ;;  %v671_v45 = vld [vmem:[#allocation5 + $0x88] sm:$0xff] }
  0x55   :  { %455 = vperm.xlu0 %1967, %v52_v33   ;;  %460 = vperm.xlu1 %1968, %v53_v34   ;;  %v1106_v46 = vld [vmem:[#allocation5 + $0x108] sm:$0xff]  ;;  %v689_v61 = vunpack.c.h.s8.bf16 %v671_v45 }
  0x56   :  { %v1124_v62 = vunpack.c.h.s8.bf16 %v1106_v46 }
  0x57   :  { %1724 = vmatpush3.bf16.msra.mxu1 %v1999_v49  ;;  %1836 = vmatpush3.bf16.msra.mxu0 %v2000_v50  ;;  %v106_v49 = vunpack.c.h.s8.bf16 %v82_v35  ;;  %v122_v50 = vunpack.c.h.s8.bf16 %v90_v36  ;;  %v677_v35 = vld [vmem:[#allocation5 + $0xb8] sm:$0xff] }
  0x58   :  { %1725 = vmatprep.subr.bf16.mxu1 %v2001_v51  ;;  %1837 = vmatprep.subr.bf16.mxu0 %v2002_v52  ;;  %v687_v51 = vunpack.c.l.s8.bf16 %v671_v45  ;;  %v1122_v52 = vunpack.c.l.s8.bf16 %v1106_v46  ;;  %v1112_v36 = vld [vmem:[#allocation5 + $0x138] sm:$0xff]  ;;  %v701_v45 = vunpack.c.h.s8.bf16 %v677_v35 }
  0x59   :  { %301 = vmatmul.mubr.bf16.gmra.mrb[8].mxu0 %v96_v53  ;;  %365 = vmatmul.mubr.bf16.gmra.mrb[8].mxu1 %v112_v54  ;;  %v60_v53 = vld [vmem:[%s2413_s2 + $0x80] sm:$0xff]  ;;  %v61_v54 = vld [vmem:[%s2413_s2 + $0x88] sm:$0xff]  ;;  %v1136_v46 = vunpack.c.h.s8.bf16 %v1112_v36 }
  0x5a   :  { %308 = vmatprep.mubr.bf16.mxu0 %v99_v55  ;;  %372 = vmatprep.mubr.bf16.mxu1 %v115_v56  ;;  %v670_v55 = vld [vmem:[#allocation5 + $0x80] sm:$0xff] }
  0x5b   :  { %1726 = vmatpush3.bf16.msra.mxu1 %v2003_v57  ;;  %1838 = vmatpush3.bf16.msra.mxu0 %v2004_v58  ;;  %v1105_v56 = vld [vmem:[#allocation5 + $0x100] sm:$0xff]  ;;  %v62_v57 = vld [vmem:[%s2413_s2 + $0x90] sm:$0xff]  ;;  %v63_v58 = vld [vmem:[%s2413_s2 + $0x98] sm:$0xff] }
  0x5c   :  { %1727 = vmatprep.subr.bf16.mxu1 %v2005_v59  ;;  %1839 = vmatprep.subr.bf16.mxu0 %v2006_v60  ;;  %v686_v59 = vunpack.c.l.s8.bf16 %v670_v55  ;;  %v1121_v60 = vunpack.c.l.s8.bf16 %v1105_v56 }
  0x5d   :  { %465 = vperm.xlu0 %1967, %v54_v37   ;;  %470 = vperm.xlu1 %1968, %v55_v38  }
  0x5f   :  { %1728 = vmatpush3.bf16.msra.mxu1 %v2007_v63  ;;  %1840 = vmatpush3.bf16.msra.mxu0 %v2008_v0  ;;  %v64_v63 = vld [vmem:[%s2413_s2 + $0xa0] sm:$0xff]  ;;  %v65_v0 = vld [vmem:[%s2413_s2 + $0xa8] sm:$0xff] }
  0x60   :  { %1729 = vmatprep.subr.bf16.mxu1 %v2009_v2  ;;  %1841 = vmatprep.subr.bf16.mxu0 %v2010_v3  ;;  %v1108_v2 = vld [vmem:[#allocation5 + $0x118] sm:$0xff]  ;;  %v66_v3 = vld [vmem:[%s2413_s2 + $0xb0] sm:$0xff] }
  0x61   :  { %309 = vmatmul.mubr.bf16.gmra.mrb[12].mxu0 %v98_v5  ;;  %373 = vmatmul.mubr.bf16.gmra.mrb[12].mxu1 %v114_v6  ;;  %v688_v5 = vunpack.c.h.s8.bf16 %v670_v55  ;;  %v1123_v6 = vunpack.c.h.s8.bf16 %v1105_v56 }
  0x62   :  { %316 = vmatprep.mubr.bf16.mxu0 %v101_v7  ;;  %380 = vmatprep.mubr.bf16.mxu1 %v117_v8  ;;  %v691_v7 = vunpack.c.l.s8.bf16 %v673_v1  ;;  %v1126_v8 = vunpack.c.l.s8.bf16 %v1108_v2 }
  0x63   :  { %1730 = vmatpush3.bf16.msra.mxu1 %v2011_v9  ;;  %1842 = vmatpush3.bf16.msra.mxu0 %v2012_v10  ;;  %v68_v9 = vld [vmem:[%s2413_s2 + $0xc0] sm:$0xff]  ;;  %v69_v10 = vld [vmem:[%s2413_s2 + $0xc8] sm:$0xff] }
  0x64   :  { %1731 = vmatprep.subr.bf16.mxu1 %v2013_v11  ;;  %1843 = vmatprep.subr.bf16.mxu0 %v2014_v12  ;;  %v672_v11 = vld [vmem:[#allocation5 + $0x90] sm:$0xff] }
  0x65   :  { %475 = vperm.xlu0 %1967, %v56_v43   ;;  %480 = vperm.xlu1 %1968, %v57_v44   ;;  %v1107_v12 = vld [vmem:[#allocation5 + $0x110] sm:$0xff]  ;;  %v690_v15 = vunpack.c.l.s8.bf16 %v672_v11  ;;  %v692_v25 = vunpack.c.h.s8.bf16 %v672_v11 }
  0x66   :  { %v1125_v16 = vunpack.c.l.s8.bf16 %v1107_v12  ;;  %v1127_v26 = vunpack.c.h.s8.bf16 %v1107_v12 }
  0x67   :  { %1732 = vmatpush3.bf16.msra.mxu1 %v2015_v17  ;;  %1844 = vmatpush3.bf16.msra.mxu0 %v2016_v18  ;;  %v693_v17 = vunpack.c.h.s8.bf16 %v673_v1  ;;  %v1128_v18 = vunpack.c.h.s8.bf16 %v1108_v2  ;;  %v680_v1 = vld [vmem:[#allocation5 + $0xd0] sm:$0xff] }
  0x68   :  { %v1115_v2 = vld [vmem:[#allocation5 + $0x150] sm:$0xff] }
  0x69   :  { %317 = vmatmul.mubr.bf16.gmra.mrb[16].mxu0 %v100_v19  ;;  %381 = vmatmul.mubr.bf16.gmra.mrb[16].mxu1 %v116_v20  ;;  %v72_v19 = vld [vmem:[%s2413_s2 + $0xe0] sm:$0xff]  ;;  %v73_v20 = vld [vmem:[%s2413_s2 + $0xe8] sm:$0xff]  ;;  %s2096_s2 = smov [#allocation7]  }
  0x6a   :  { %324 = vmatprep.mubr.bf16.mxu0 %v103_v21  ;;  %388 = vmatprep.mubr.bf16.mxu1 %v119_v22  ;;  %v675_v21 = vld [vmem:[#allocation5 + $0xa8] sm:$0xff]  ;;  %s1544_s17 = sshll.u32 %s2096_s2, 4  ;;  %s1545_s17 = int_to_ptr.vmem [resolvable:$true] %s1544_s17 }
  0x6b   :  { %485 = vperm.xlu0 %1967, %v58_v47   ;;  %490 = vperm.xlu1 %1968, %v59_v48   ;;  %v1110_v22 = vld [vmem:[#allocation5 + $0x128] sm:$0xff]  ;;  %v695_v27 = vunpack.c.l.s8.bf16 %v675_v21  ;;  %v697_v33 = vunpack.c.h.s8.bf16 %v675_v21  ;;  %s2061_s18 = scalar_lea.vmem %s1545_s17, 12288  ;;  %p2066_p3 = scmp.lt.s32.totalorder %s1545_s17, %s1545_s17 }
  0x6c   :  { %v1130_v28 = vunpack.c.l.s8.bf16 %v1110_v22  ;;  %v1132_v34 = vunpack.c.h.s8.bf16 %v1110_v22  ;;  %v679_v47 = vld [vmem:[#allocation5 + $0xc8] sm:$0xff]  ;;  %p2062_p2 = scmp.ne.s32.totalorder %s1545_s17, %s2061_s18  ;;  %p2067_p4 = scmp.lt.s32.totalorder %s2061_s18, %s2061_s18 }
  0x6d   :  { %v1114_v48 = vld [vmem:[#allocation5 + $0x148] sm:$0xff] }
  0x6e   :  { %p2068_p5 = por %p2067_p4, %p2066_p3 }
  0x6f   :  { %495 = vperm.xlu0 %1967, %v60_v53   ;;  %500 = vperm.xlu1 %1968, %v61_v54   ;;  %v678_v53 = vld [vmem:[#allocation5 + $0xc0] sm:$0xff] }
  0x70   :  { %v1113_v54 = vld [vmem:[#allocation5 + $0x140] sm:$0xff]  ;;  %v702_v55 = vunpack.c.l.s8.bf16 %v678_v53  ;;  %p2069_p6 = pnand %p2068_p5, %p2062_p2 }
  0x71   :  { %325 = vmatmul.mubr.bf16.gmra.mrb[20].mxu0 %v102_v29  ;;  %389 = vmatmul.mubr.bf16.gmra.mrb[20].mxu1 %v118_v30  ;;  %v674_v29 = vld [vmem:[#allocation5 + $0xa0] sm:$0xff]  ;;  %v1137_v56 = vunpack.c.l.s8.bf16 %v1113_v54 }
  0x72   :  { %332 = vmatprep.mubr.bf16.mxu0 %v105_v31  ;;  %396 = vmatprep.mubr.bf16.mxu1 %v121_v32  ;;  %v1109_v30 = vld [vmem:[#allocation5 + $0x120] sm:$0xff]  ;;  %v694_v31 = vunpack.c.l.s8.bf16 %v674_v29  ;;  %v696_v37 = vunpack.c.h.s8.bf16 %v674_v29  ;;  %v684_v29 = vld [vmem:[#allocation5 + $0xf0] sm:$0xff] }
  0x73   :  { %505 = vperm.xlu0 %1967, %v62_v57   ;;  %510 = vperm.xlu1 %1968, %v63_v58   ;;  %v1129_v32 = vunpack.c.l.s8.bf16 %v1109_v30  ;;  %v1131_v38 = vunpack.c.h.s8.bf16 %v1109_v30  ;;  %v705_v57 = vunpack.c.h.s8.bf16 %v679_v47  ;;  %v1140_v58 = vunpack.c.h.s8.bf16 %v1114_v48  ;;  %v1119_v30 = vld [vmem:[#allocation5 + $0x170] sm:$0xff] }
  0x77   :  { %515 = vperm.xlu0 %1967, %v64_v63   ;;  %520 = vperm.xlu1 %1968, %v65_v0  }
  0x79   :  { %333 = vmatmul.mubr.bf16.gmra.mrb[24].mxu0 %v104_v39  ;;  %397 = vmatmul.mubr.bf16.gmra.mrb[24].mxu1 %v120_v40  ;;  %v699_v39 = vunpack.c.l.s8.bf16 %v677_v35  ;;  %v1134_v40 = vunpack.c.l.s8.bf16 %v1112_v36 }
  0x7a   :  { %340 = vmatprep.mubr.bf16.mxu0 %v107_v41  ;;  %404 = vmatprep.mubr.bf16.mxu1 %v123_v42  ;;  %v676_v41 = vld [vmem:[#allocation5 + $0xb0] sm:$0xff] }
  0x7b   :  { %525 = vperm.xlu0 %1967, %v66_v3   ;;  %530 = vperm.xlu1 %1968, %v67_v4   ;;  %v1111_v42 = vld [vmem:[#allocation5 + $0x130] sm:$0xff]  ;;  %v698_v43 = vunpack.c.l.s8.bf16 %v676_v41  ;;  %v706_v3 = vunpack.c.l.s8.bf16 %v680_v1  ;;  %v1141_v4 = vunpack.c.l.s8.bf16 %v1115_v2 }
  0x7c   :  { %v1133_v44 = vunpack.c.l.s8.bf16 %v1111_v42 }
  0x7f   :  { %535 = vperm.xlu0 %1967, %v68_v9   ;;  %540 = vperm.xlu1 %1968, %v69_v10   ;;  %v708_v9 = vunpack.c.h.s8.bf16 %v680_v1  ;;  %v1143_v10 = vunpack.c.h.s8.bf16 %v1115_v2 }
  0x81   :  { %341 = vmatmul.mubr.bf16.gmra.mrb[28].mxu0 %v106_v49  ;;  %405 = vmatmul.mubr.bf16.gmra.mrb[28].mxu1 %v122_v50  ;;  %v700_v49 = vunpack.c.h.s8.bf16 %v676_v41  ;;  %v1135_v50 = vunpack.c.h.s8.bf16 %v1111_v42 }
  0x82   :  { %879 = vmatprep.mubr.bf16.mxu1 %v687_v51  ;;  %1314 = vmatprep.mubr.bf16.mxu0 %v1122_v52  ;;  %v703_v51 = vunpack.c.l.s8.bf16 %v679_v47  ;;  %v1138_v52 = vunpack.c.l.s8.bf16 %v1114_v48 }
  0x83   :  { %545 = vperm.xlu0 %1967, %v70_v13   ;;  %550 = vperm.xlu1 %1968, %v71_v14   ;;  %v682_v13 = vld [vmem:[#allocation5 + $0xe0] sm:$0xff] }
  0x84   :  { %v1117_v14 = vld [vmem:[#allocation5 + $0x160] sm:$0xff] }
  0x87   :  { %555 = vperm.xlu0 %1967, %v72_v19   ;;  %560 = vperm.xlu1 %1968, %v73_v20   ;;  %v685_v19 = vld [vmem:[#allocation5 + $0xf8] sm:$0xff] }
  0x88   :  { %v1120_v20 = vld [vmem:[#allocation5 + $0x178] sm:$0xff] }
  0x89   :  { %880 = vmatmul.mubr.bf16.vlgmr.msra.gmra.mrb[32].mxu1 %v686_v59  ;;  %1315 = vmatmul.mubr.bf16.vlgmr.msra.gmra.mrb[32].mxu0 %v1121_v60  ;;  %v681_v59 = vld [vmem:[#allocation5 + $0xd8] sm:$0xff] }
  0x8a   :  { %887 = vmatprep.mubr.bf16.mxu1 %v689_v61  ;;  %1322 = vmatprep.mubr.bf16.mxu0 %v1124_v62  ;;  %v1116_v60 = vld [vmem:[#allocation5 + $0x158] sm:$0xff]  ;;  %v704_v61 = vunpack.c.h.s8.bf16 %v678_v53  ;;  %v1139_v62 = vunpack.c.h.s8.bf16 %v1113_v54  ;;  %v707_v63 = vunpack.c.l.s8.bf16 %v681_v59 }
  0x8b   :  { %565 = vperm.xlu0 %1967, %v74_v23   ;;  %570 = vperm.xlu1 %1968, %v75_v24   ;;  %v1142_v0 = vunpack.c.l.s8.bf16 %v1116_v60  ;;  %v712_v23 = vunpack.c.h.s8.bf16 %v682_v13  ;;  %v1147_v24 = vunpack.c.h.s8.bf16 %v1117_v14 }
  0x91   :  { %888 = vmatmul.mubr.bf16.gmra.mrb[36].mxu1 %v688_v5  ;;  %1323 = vmatmul.mubr.bf16.gmra.mrb[36].mxu0 %v1123_v6  ;;  %v709_v5 = vunpack.c.h.s8.bf16 %v681_v59  ;;  %v1144_v6 = vunpack.c.h.s8.bf16 %v1116_v60 }
  0x92   :  { %895 = vmatprep.mubr.bf16.mxu1 %v691_v7  ;;  %1330 = vmatprep.mubr.bf16.mxu0 %v1126_v8  ;;  %v683_v7 = vld [vmem:[#allocation5 + $0xe8] sm:$0xff] }
  0x93   :  { %v1118_v8 = vld [vmem:[#allocation5 + $0x168] sm:$0xff]  ;;  %v711_v11 = vunpack.c.l.s8.bf16 %v683_v7 }
  0x94   :  { %v1146_v12 = vunpack.c.l.s8.bf16 %v1118_v8 }
  0x99   :  { %896 = vmatmul.mubr.bf16.gmra.mrb[40].mxu1 %v690_v15  ;;  %1331 = vmatmul.mubr.bf16.gmra.mrb[40].mxu0 %v1125_v16  ;;  %v710_v15 = vunpack.c.l.s8.bf16 %v682_v13  ;;  %v1145_v16 = vunpack.c.l.s8.bf16 %v1117_v14 }
  0x9a   :  { %903 = vmatprep.mubr.bf16.mxu1 %v693_v17  ;;  %1338 = vmatprep.mubr.bf16.mxu0 %v1128_v18  ;;  %v713_v17 = vunpack.c.h.s8.bf16 %v683_v7  ;;  %v1148_v18 = vunpack.c.h.s8.bf16 %v1118_v8 }
  0xa1   :  { %904 = vmatmul.mubr.bf16.gmra.mrb[44].mxu1 %v692_v25  ;;  %1339 = vmatmul.mubr.bf16.gmra.mrb[44].mxu0 %v1127_v26  ;;  %v715_v25 = vunpack.c.l.s8.bf16 %v685_v19  ;;  %v1150_v26 = vunpack.c.l.s8.bf16 %v1120_v20 }
  0xa2   :  { %911 = vmatprep.mubr.bf16.mxu1 %v695_v27  ;;  %1346 = vmatprep.mubr.bf16.mxu0 %v1130_v28 }
  0xa9   :  { %912 = vmatmul.mubr.bf16.gmra.mrb[48].mxu1 %v694_v31  ;;  %1347 = vmatmul.mubr.bf16.gmra.mrb[48].mxu0 %v1129_v32  ;;  %v714_v31 = vunpack.c.l.s8.bf16 %v684_v29  ;;  %v1149_v32 = vunpack.c.l.s8.bf16 %v1119_v30 }
  0xaa   :  { %919 = vmatprep.mubr.bf16.mxu1 %v697_v33  ;;  %1354 = vmatprep.mubr.bf16.mxu0 %v1132_v34  ;;  %v717_v33 = vunpack.c.h.s8.bf16 %v685_v19  ;;  %v1152_v34 = vunpack.c.h.s8.bf16 %v1120_v20 }
  0xb1   :  { %920 = vmatmul.mubr.bf16.gmra.mrb[52].mxu1 %v696_v37  ;;  %1355 = vmatmul.mubr.bf16.gmra.mrb[52].mxu0 %v1131_v38  ;;  %v716_v37 = vunpack.c.h.s8.bf16 %v684_v29  ;;  %v1151_v38 = vunpack.c.h.s8.bf16 %v1119_v30 }
  0xb2   :  { %927 = vmatprep.mubr.bf16.mxu1 %v699_v39  ;;  %1362 = vmatprep.mubr.bf16.mxu0 %v1134_v40 }
  0xb7   :  { %v2239_v21 = vpop.permute.xlu0 %415 }
  0xb8   :  { %v2241_v22 = vpop.permute.xlu1 %425 }
  0xb9   :  { %928 = vmatmul.mubr.bf16.gmra.mrb[56].mxu1 %v698_v43  ;;  %1363 = vmatmul.mubr.bf16.gmra.mrb[56].mxu0 %v1133_v44 }
  0xba   :  { %935 = vmatprep.mubr.bf16.mxu1 %v701_v45  ;;  %1370 = vmatprep.mubr.bf16.mxu0 %v1136_v46 }
  0xbb   :  { %v2243_v27 = vpop.permute.xlu0 %420 }
  0xbf   :  { %v2245_v28 = vpop.permute.xlu1 %430 }
  0xc1   :  { %936 = vmatmul.mubr.bf16.gmra.mrb[60].mxu1 %v700_v49  ;;  %1371 = vmatmul.mubr.bf16.gmra.mrb[60].mxu0 %v1135_v50 }
  0xc2   :  { %943 = vmatprep.mubr.bf16.mxu1 %v703_v51  ;;  %1378 = vmatprep.mubr.bf16.mxu0 %v1138_v52 }
  0xc7   :  { %v2247_v35 = vpop.permute.xlu0 %435  ;;  %v2249_v36 = vpop.permute.xlu1 %440 }
  0xc9   :  { %944 = vmatmul.mubr.bf16.gmra.mrb[64].mxu1 %v702_v55  ;;  %1379 = vmatmul.mubr.bf16.gmra.mrb[64].mxu0 %v1137_v56 }
  0xca   :  { %951 = vmatprep.mubr.bf16.mxu1 %v705_v57  ;;  %1386 = vmatprep.mubr.bf16.mxu0 %v1140_v58 }
  0xcc   :  { %v2251_v39 = vpop.permute.xlu0 %445  ;;  %v2253_v40 = vpop.permute.xlu1 %450 }
  0xd1   :  { %952 = vmatmul.mubr.bf16.gmra.mrb[68].mxu1 %v704_v61  ;;  %1387 = vmatmul.mubr.bf16.gmra.mrb[68].mxu0 %v1139_v62 }
  0xd2   :  { %959 = vmatprep.mubr.bf16.mxu1 %v707_v63  ;;  %1394 = vmatprep.mubr.bf16.mxu0 %v1142_v0 }
  0xd4   :  { %v2255_v41 = vpop.permute.xlu0 %455  ;;  %v2257_v42 = vpop.permute.xlu1 %460 }
  0xd9   :  { %960 = vmatmul.mubr.bf16.gmra.mrb[72].mxu1 %v706_v3  ;;  %1395 = vmatmul.mubr.bf16.gmra.mrb[72].mxu0 %v1141_v4 }
  0xda   :  { %967 = vmatprep.mubr.bf16.mxu1 %v709_v5  ;;  %1402 = vmatprep.mubr.bf16.mxu0 %v1144_v6 }
  0xdc   :  { %v2259_v43 = vpop.permute.xlu0 %465  ;;  %v2261_v44 = vpop.permute.xlu1 %470 }
  0xe1   :  { %968 = vmatmul.mubr.bf16.gmra.mrb[76].mxu1 %v708_v9  ;;  %1403 = vmatmul.mubr.bf16.gmra.mrb[76].mxu0 %v1143_v10 }
  0xe2   :  { %975 = vmatprep.mubr.bf16.mxu1 %v711_v11  ;;  %1410 = vmatprep.mubr.bf16.mxu0 %v1146_v12 }
  0xe4   :  { %v2263_v45 = vpop.permute.xlu0 %475  ;;  %v2265_v46 = vpop.permute.xlu1 %480 }
  0xe9   :  { %976 = vmatmul.mubr.bf16.gmra.mrb[80].mxu1 %v710_v15  ;;  %1411 = vmatmul.mubr.bf16.gmra.mrb[80].mxu0 %v1145_v16 }
  0xea   :  { %983 = vmatprep.mubr.bf16.mxu1 %v713_v17  ;;  %1418 = vmatprep.mubr.bf16.mxu0 %v1148_v18  ;;  %v2267_v47 = vpop.permute.xlu0 %485  ;;  %v2269_v48 = vpop.permute.xlu1 %490 }
  0xee   :  { %v2271_v49 = vpop.permute.xlu0 %495  ;;  %v2273_v50 = vpop.permute.xlu1 %500 }
  0xf1   :  { %984 = vmatmul.mubr.bf16.gmra.mrb[84].mxu1 %v712_v23  ;;  %1419 = vmatmul.mubr.bf16.gmra.mrb[84].mxu0 %v1147_v24 }
  0xf2   :  { %991 = vmatprep.mubr.bf16.mxu1 %v715_v25  ;;  %1426 = vmatprep.mubr.bf16.mxu0 %v1150_v26  ;;  %v2279_v5 = vpop.permute.xlu0 %505  ;;  %v2281_v6 = vpop.permute.xlu1 %510 }
  0xf9   :  { %992 = vmatmul.mubr.bf16.gmra.mrb[88].mxu1 %v714_v31  ;;  %1427 = vmatmul.mubr.bf16.gmra.mrb[88].mxu0 %v1149_v32  ;;  %v2287_v31 = vpop.permute.xlu0 %515  ;;  %v2289_v32 = vpop.permute.xlu1 %520 }
  0xfa   :  { %999 = vmatprep.mubr.bf16.mxu1 %v717_v33  ;;  %1434 = vmatprep.mubr.bf16.mxu0 %v1152_v34 }
 0x101   :  { %1000 = vmatmul.mubr.bf16.gmra.mrb[92].mxu1 %v716_v37  ;;  %1435 = vmatmul.mubr.bf16.gmra.mrb[92].mxu0 %v1151_v38 }
 0x11c   :  { %v1621_v51 = vpop.f32.mrb[0].mxu0  ;;  %v1669_v52 = vpop.f32.mrb[0].mxu1 }
 0x11d   :  { %v1622_v53 = vpop.f32.mrb[1].mxu0  ;;  %v1670_v54 = vpop.f32.mrb[1].mxu1 }
 0x11e   :  { %v1623_v55 = vadd.f32 %v1622_v53, %v1621_v51  ;;  %v1671_v56 = vadd.f32 %v1670_v54, %v1669_v52  ;;  %v1624_v57 = vpop.f32.mrb[2].mxu0  ;;  %v1672_v58 = vpop.f32.mrb[2].mxu1 }
 0x11f   :  { %v1625_v59 = vpop.f32.mrb[3].mxu0  ;;  %v1673_v60 = vpop.f32.mrb[3].mxu1 }
 0x120   :  { %v573_v61 = vmul.f32 %v1623_v55, %v2239_v21  ;;  %v1626_v62 = vadd.f32 %v1625_v59, %v1624_v57  ;;  %v1674_v63 = vadd.f32 %v1673_v60, %v1672_v58  ;;  %v589_v0 = vmul.f32 %v1671_v56, %v2271_v49 }
 0x122   :  { %v605_v1 = vmax.f32 %v573_v61, 0.0  ;;  %v574_v2 = vmul.f32 %v1626_v62, %v2243_v27  ;;  %v621_v3 = vmax.f32 %v589_v0, 0.0  ;;  %v590_v4 = vmul.f32 %v1674_v63, %v2273_v50 }
 0x124   :  { %637 = vst [vmem:[#allocation7] sm:$0xff] %v605_v1  ;;  %v606_v7 = vmax.f32 %v574_v2, 0.0  ;;  %653 = vst [vmem:[#allocation7 + $0x180] sm:$0xff] %v621_v3  ;;  %v622_v8 = vmax.f32 %v590_v4, 0.0  ;;  %v1627_v9 = vpop.f32.mrb[4].mxu0  ;;  %v1675_v10 = vpop.f32.mrb[4].mxu1 }
 0x125   :  { %v1628_v11 = vpop.f32.mrb[5].mxu0  ;;  %v1676_v12 = vpop.f32.mrb[5].mxu1 }
 0x126   :  { %638 = vst [vmem:[#allocation7 + $0x18] sm:$0xff] %v606_v7  ;;  %654 = vst [vmem:[#allocation7 + $0x198] sm:$0xff] %v622_v8  ;;  %v1629_v13 = vadd.f32 %v1628_v11, %v1627_v9  ;;  %v1677_v14 = vadd.f32 %v1676_v12, %v1675_v10  ;;  %v1630_v15 = vpop.f32.mrb[6].mxu0  ;;  %v1678_v16 = vpop.f32.mrb[6].mxu1 }
 0x127   :  { %v1631_v17 = vpop.f32.mrb[7].mxu0  ;;  %v1679_v18 = vpop.f32.mrb[7].mxu1 }
 0x128   :  { %v575_v19 = vmul.f32 %v1629_v13, %v2241_v22  ;;  %v1632_v20 = vadd.f32 %v1631_v17, %v1630_v15  ;;  %v1680_v23 = vadd.f32 %v1679_v18, %v1678_v16  ;;  %v591_v24 = vmul.f32 %v1677_v14, %v2279_v5  ;;  %v2295_v3 = vpop.permute.xlu0 %525  ;;  %v2297_v4 = vpop.permute.xlu1 %530 }
 0x12a   :  { %v607_v25 = vmax.f32 %v575_v19, 0.0  ;;  %v576_v26 = vmul.f32 %v1632_v20, %v2245_v28  ;;  %v623_v29 = vmax.f32 %v591_v24, 0.0  ;;  %v592_v30 = vmul.f32 %v1680_v23, %v2281_v6 }
 0x12c   :  { %639 = vst [vmem:[#allocation7 + $0x30] sm:$0xff] %v607_v25  ;;  %v608_v33 = vmax.f32 %v576_v26, 0.0  ;;  %655 = vst [vmem:[#allocation7 + $0x1b0] sm:$0xff] %v623_v29  ;;  %v624_v34 = vmax.f32 %v592_v30, 0.0  ;;  %v1633_v37 = vpop.f32.mrb[8].mxu0  ;;  %v1681_v38 = vpop.f32.mrb[8].mxu1 }
 0x12d   :  { %v1634_v51 = vpop.f32.mrb[9].mxu0  ;;  %v1682_v52 = vpop.f32.mrb[9].mxu1 }
 0x12e   :  { %640 = vst [vmem:[#allocation7 + $0x48] sm:$0xff] %v608_v33  ;;  %656 = vst [vmem:[#allocation7 + $0x1c8] sm:$0xff] %v624_v34  ;;  %v1635_v53 = vadd.f32 %v1634_v51, %v1633_v37  ;;  %v1683_v54 = vadd.f32 %v1682_v52, %v1681_v38  ;;  %v1636_v55 = vpop.f32.mrb[10].mxu0  ;;  %v1684_v56 = vpop.f32.mrb[10].mxu1 }
 0x12f   :  { %v1637_v57 = vpop.f32.mrb[11].mxu0  ;;  %v1685_v58 = vpop.f32.mrb[11].mxu1 }
 0x130   :  { %v577_v59 = vmul.f32 %v1635_v53, %v2247_v35  ;;  %v1638_v60 = vadd.f32 %v1637_v57, %v1636_v55  ;;  %v1686_v61 = vadd.f32 %v1685_v58, %v1684_v56  ;;  %v593_v62 = vmul.f32 %v1683_v54, %v2287_v31  ;;  %v2303_v33 = vpop.permute.xlu0 %535  ;;  %v2305_v34 = vpop.permute.xlu1 %540 }
 0x132   :  { %v609_v63 = vmax.f32 %v577_v59, 0.0  ;;  %v578_v0 = vmul.f32 %v1638_v60, %v2249_v36  ;;  %v625_v1 = vmax.f32 %v593_v62, 0.0  ;;  %v594_v2 = vmul.f32 %v1686_v61, %v2289_v32 }
 0x134   :  { %641 = vst [vmem:[#allocation7 + $0x60] sm:$0xff] %v609_v63  ;;  %v610_v7 = vmax.f32 %v578_v0, 0.0  ;;  %657 = vst [vmem:[#allocation7 + $0x1e0] sm:$0xff] %v625_v1  ;;  %v626_v8 = vmax.f32 %v594_v2, 0.0  ;;  %v1639_v9 = vpop.f32.mrb[12].mxu0  ;;  %v1687_v10 = vpop.f32.mrb[12].mxu1 }
 0x135   :  { %v1640_v11 = vpop.f32.mrb[13].mxu0  ;;  %v1688_v12 = vpop.f32.mrb[13].mxu1 }
 0x136   :  { %642 = vst [vmem:[#allocation7 + $0x78] sm:$0xff] %v610_v7  ;;  %658 = vst [vmem:[#allocation7 + $0x1f8] sm:$0xff] %v626_v8  ;;  %v1641_v13 = vadd.f32 %v1640_v11, %v1639_v9  ;;  %v1689_v14 = vadd.f32 %v1688_v12, %v1687_v10  ;;  %v1642_v15 = vpop.f32.mrb[14].mxu0  ;;  %v1690_v16 = vpop.f32.mrb[14].mxu1 }
 0x137   :  { %v1643_v17 = vpop.f32.mrb[15].mxu0  ;;  %v1691_v18 = vpop.f32.mrb[15].mxu1 }
 0x138   :  { %v579_v19 = vmul.f32 %v1641_v13, %v2251_v39  ;;  %v1644_v20 = vadd.f32 %v1643_v17, %v1642_v15  ;;  %v1692_v23 = vadd.f32 %v1691_v18, %v1690_v16  ;;  %v595_v24 = vmul.f32 %v1689_v14, %v2295_v3  ;;  %v2311_v9 = vpop.permute.xlu0 %545  ;;  %v2313_v10 = vpop.permute.xlu1 %550 }
 0x13a   :  { %v611_v25 = vmax.f32 %v579_v19, 0.0  ;;  %v580_v26 = vmul.f32 %v1644_v20, %v2253_v40  ;;  %v627_v29 = vmax.f32 %v595_v24, 0.0  ;;  %v596_v30 = vmul.f32 %v1692_v23, %v2297_v4 }
 0x13c   :  { %643 = vst [vmem:[#allocation7 + $0x90] sm:$0xff] %v611_v25  ;;  %v612_v37 = vmax.f32 %v580_v26, 0.0  ;;  %659 = vst [vmem:[#allocation7 + $0x210] sm:$0xff] %v627_v29  ;;  %v628_v38 = vmax.f32 %v596_v30, 0.0  ;;  %v1645_v51 = vpop.f32.mrb[16].mxu0  ;;  %v1693_v52 = vpop.f32.mrb[16].mxu1 }
 0x13d   :  { %v1646_v53 = vpop.f32.mrb[17].mxu0  ;;  %v1694_v54 = vpop.f32.mrb[17].mxu1 }
 0x13e   :  { %644 = vst [vmem:[#allocation7 + $0xa8] sm:$0xff] %v612_v37  ;;  %660 = vst [vmem:[#allocation7 + $0x228] sm:$0xff] %v628_v38  ;;  %v1647_v55 = vadd.f32 %v1646_v53, %v1645_v51  ;;  %v1695_v56 = vadd.f32 %v1694_v54, %v1693_v52  ;;  %v1648_v57 = vpop.f32.mrb[18].mxu0  ;;  %v1696_v58 = vpop.f32.mrb[18].mxu1 }
 0x13f   :  { %v1649_v59 = vpop.f32.mrb[19].mxu0  ;;  %v1697_v60 = vpop.f32.mrb[19].mxu1 }
 0x140   :  { %v581_v61 = vmul.f32 %v1647_v55, %v2255_v41  ;;  %v1650_v62 = vadd.f32 %v1649_v59, %v1648_v57  ;;  %v1698_v63 = vadd.f32 %v1697_v60, %v1696_v58  ;;  %v597_v0 = vmul.f32 %v1695_v56, %v2303_v33  ;;  %v2319_v53 = vpop.permute.xlu0 %555  ;;  %v2321_v54 = vpop.permute.xlu1 %560 }
 0x142   :  { %v613_v1 = vmax.f32 %v581_v61, 0.0  ;;  %v582_v2 = vmul.f32 %v1650_v62, %v2257_v42  ;;  %v629_v7 = vmax.f32 %v597_v0, 0.0  ;;  %v598_v8 = vmul.f32 %v1698_v63, %v2305_v34 }
 0x144   :  { %645 = vst [vmem:[#allocation7 + $0xc0] sm:$0xff] %v613_v1  ;;  %v614_v11 = vmax.f32 %v582_v2, 0.0  ;;  %661 = vst [vmem:[#allocation7 + $0x240] sm:$0xff] %v629_v7  ;;  %v630_v12 = vmax.f32 %v598_v8, 0.0  ;;  %v1651_v13 = vpop.f32.mrb[20].mxu0  ;;  %v1699_v14 = vpop.f32.mrb[20].mxu1 }
 0x145   :  { %v1652_v15 = vpop.f32.mrb[21].mxu0  ;;  %v1700_v16 = vpop.f32.mrb[21].mxu1 }
 0x146   :  { %646 = vst [vmem:[#allocation7 + $0xd8] sm:$0xff] %v614_v11  ;;  %662 = vst [vmem:[#allocation7 + $0x258] sm:$0xff] %v630_v12  ;;  %v1653_v17 = vadd.f32 %v1652_v15, %v1651_v13  ;;  %v1701_v18 = vadd.f32 %v1700_v16, %v1699_v14  ;;  %v1654_v19 = vpop.f32.mrb[22].mxu0  ;;  %v1702_v20 = vpop.f32.mrb[22].mxu1 }
 0x147   :  { %v1655_v23 = vpop.f32.mrb[23].mxu0  ;;  %v1703_v24 = vpop.f32.mrb[23].mxu1 }
 0x148   :  { %v583_v25 = vmul.f32 %v1653_v17, %v2259_v43  ;;  %v1656_v26 = vadd.f32 %v1655_v23, %v1654_v19  ;;  %v1704_v29 = vadd.f32 %v1703_v24, %v1702_v20  ;;  %v599_v30 = vmul.f32 %v1701_v18, %v2311_v9  ;;  %v2327_v17 = vpop.permute.xlu0 %565  ;;  %v2329_v18 = vpop.permute.xlu1 %570 }
 0x14a   :  { %v615_v37 = vmax.f32 %v583_v25, 0.0  ;;  %v584_v38 = vmul.f32 %v1656_v26, %v2261_v44  ;;  %v631_v51 = vmax.f32 %v599_v30, 0.0  ;;  %v600_v52 = vmul.f32 %v1704_v29, %v2313_v10 }
 0x14c   :  { %647 = vst [vmem:[#allocation7 + $0xf0] sm:$0xff] %v615_v37  ;;  %v616_v55 = vmax.f32 %v584_v38, 0.0  ;;  %663 = vst [vmem:[#allocation7 + $0x270] sm:$0xff] %v631_v51  ;;  %v632_v56 = vmax.f32 %v600_v52, 0.0  ;;  %v1657_v57 = vpop.f32.mrb[24].mxu0  ;;  %v1705_v58 = vpop.f32.mrb[24].mxu1 }
 0x14d   :  { %v1658_v59 = vpop.f32.mrb[25].mxu0  ;;  %v1706_v60 = vpop.f32.mrb[25].mxu1 }
 0x14e   :  { %648 = vst [vmem:[#allocation7 + $0x108] sm:$0xff] %v616_v55  ;;  %664 = vst [vmem:[#allocation7 + $0x288] sm:$0xff] %v632_v56  ;;  %v1659_v61 = vadd.f32 %v1658_v59, %v1657_v57  ;;  %v1707_v62 = vadd.f32 %v1706_v60, %v1705_v58  ;;  %v1660_v63 = vpop.f32.mrb[26].mxu0  ;;  %v1708_v0 = vpop.f32.mrb[26].mxu1 }
 0x14f   :  { %v1661_v1 = vpop.f32.mrb[27].mxu0  ;;  %v1709_v2 = vpop.f32.mrb[27].mxu1 }
 0x150   :  { %v585_v7 = vmul.f32 %v1659_v61, %v2263_v45  ;;  %v1662_v8 = vadd.f32 %v1661_v1, %v1660_v63  ;;  %v1710_v11 = vadd.f32 %v1709_v2, %v1708_v0  ;;  %v601_v12 = vmul.f32 %v1707_v62, %v2319_v53 }
 0x152   :  { %v617_v13 = vmax.f32 %v585_v7, 0.0  ;;  %v586_v14 = vmul.f32 %v1662_v8, %v2265_v46  ;;  %v633_v15 = vmax.f32 %v601_v12, 0.0  ;;  %v602_v16 = vmul.f32 %v1710_v11, %v2321_v54 }
 0x154   :  { %649 = vst [vmem:[#allocation7 + $0x120] sm:$0xff] %v617_v13  ;;  %v618_v19 = vmax.f32 %v586_v14, 0.0  ;;  %665 = vst [vmem:[#allocation7 + $0x2a0] sm:$0xff] %v633_v15  ;;  %v634_v20 = vmax.f32 %v602_v16, 0.0  ;;  %v1663_v23 = vpop.f32.mrb[28].mxu0  ;;  %v1711_v24 = vpop.f32.mrb[28].mxu1 }
 0x155   :  { %v1664_v25 = vpop.f32.mrb[29].mxu0  ;;  %v1712_v26 = vpop.f32.mrb[29].mxu1 }
 0x156   :  { %650 = vst [vmem:[#allocation7 + $0x138] sm:$0xff] %v618_v19  ;;  %666 = vst [vmem:[#allocation7 + $0x2b8] sm:$0xff] %v634_v20  ;;  %v1665_v29 = vadd.f32 %v1664_v25, %v1663_v23  ;;  %v1713_v30 = vadd.f32 %v1712_v26, %v1711_v24  ;;  %v1666_v37 = vpop.f32.mrb[30].mxu0  ;;  %v1714_v38 = vpop.f32.mrb[30].mxu1 }
 0x157   :  { %v1667_v51 = vpop.f32.mrb[31].mxu0  ;;  %v1715_v52 = vpop.f32.mrb[31].mxu1 }
 0x158   :  { %v587_v55 = vmul.f32 %v1665_v29, %v2267_v47  ;;  %v1668_v56 = vadd.f32 %v1667_v51, %v1666_v37  ;;  %v1716_v57 = vadd.f32 %v1715_v52, %v1714_v38  ;;  %v603_v58 = vmul.f32 %v1713_v30, %v2327_v17 }
 0x15a   :  { %v619_v59 = vmax.f32 %v587_v55, 0.0  ;;  %v588_v60 = vmul.f32 %v1668_v56, %v2269_v48  ;;  %v635_v61 = vmax.f32 %v603_v58, 0.0  ;;  %v604_v62 = vmul.f32 %v1716_v57, %v2329_v18 }
 0x15c   :  { %651 = vst [vmem:[#allocation7 + $0x150] sm:$0xff] %v619_v59  ;;  %v620_v63 = vmax.f32 %v588_v60, 0.0  ;;  %667 = vst [vmem:[#allocation7 + $0x2d0] sm:$0xff] %v635_v61  ;;  %v636_v0 = vmax.f32 %v604_v62, 0.0  ;;  %v1733_v1 = vpop.f32.mrb[32].mxu1  ;;  %v1845_v2 = vpop.f32.mrb[32].mxu0 }
 0x15d   :  { %v1734_v7 = vpop.f32.mrb[33].mxu1  ;;  %v1846_v8 = vpop.f32.mrb[33].mxu0 }
 0x15e   :  { %652 = vst [vmem:[#allocation7 + $0x168] sm:$0xff] %v620_v63  ;;  %668 = vst [vmem:[#allocation7 + $0x2e8] sm:$0xff] %v636_v0  ;;  %v1735_v11 = vadd.f32 %v1734_v7, %v1733_v1  ;;  %v1847_v12 = vadd.f32 %v1846_v8, %v1845_v2  ;;  %v1736_v13 = vpop.f32.mrb[34].mxu1  ;;  %v1848_v14 = vpop.f32.mrb[34].mxu0 }
 0x15f   :  { %v1737_v15 = vpop.f32.mrb[35].mxu1  ;;  %v1849_v16 = vpop.f32.mrb[35].mxu0 }
 0x160   :  { %v1008_v19 = vmul.f32 %v1735_v11, %v2239_v21  ;;  %v1443_v20 = vmul.f32 %v1847_v12, %v2239_v21  ;;  %v1738_v23 = vadd.f32 %v1737_v15, %v1736_v13  ;;  %v1850_v24 = vadd.f32 %v1849_v16, %v1848_v14 }
 0x162   :  { %v1040_v25 = vmax.f32 %v1008_v19, 0.0  ;;  %v1475_v26 = vmax.f32 %v1443_v20, 0.0  ;;  %v1009_v29 = vmul.f32 %v1738_v23, %v2243_v27  ;;  %v1444_v30 = vmul.f32 %v1850_v24, %v2243_v27 }
 0x164   :  { %1072 = vst [vmem:[#allocation7 + $0x8] sm:$0xff] %v1040_v25  ;;  %1507 = vst [vmem:[#allocation7 + $0x10] sm:$0xff] %v1475_v26  ;;  %v1041_v37 = vmax.f32 %v1009_v29, 0.0  ;;  %v1476_v38 = vmax.f32 %v1444_v30, 0.0  ;;  %v1739_v51 = vpop.f32.mrb[36].mxu1  ;;  %v1851_v52 = vpop.f32.mrb[36].mxu0 }
 0x165   :  { %v1740_v55 = vpop.f32.mrb[37].mxu1  ;;  %v1852_v56 = vpop.f32.mrb[37].mxu0 }
 0x166   :  { %1073 = vst [vmem:[#allocation7 + $0x20] sm:$0xff] %v1041_v37  ;;  %1508 = vst [vmem:[#allocation7 + $0x28] sm:$0xff] %v1476_v38  ;;  %v1741_v57 = vadd.f32 %v1740_v55, %v1739_v51  ;;  %v1853_v21 = vadd.f32 %v1852_v56, %v1851_v52  ;;  %v1742_v58 = vpop.f32.mrb[38].mxu1  ;;  %v1854_v59 = vpop.f32.mrb[38].mxu0 }
 0x167   :  { %v1743_v60 = vpop.f32.mrb[39].mxu1  ;;  %v1855_v61 = vpop.f32.mrb[39].mxu0 }
 0x168   :  { %v1010_v62 = vmul.f32 %v1741_v57, %v2241_v22  ;;  %v1445_v27 = vmul.f32 %v1853_v21, %v2241_v22  ;;  %v1744_v63 = vadd.f32 %v1743_v60, %v1742_v58  ;;  %v1856_v0 = vadd.f32 %v1855_v61, %v1854_v59 }
 0x16a   :  { %v1042_v1 = vmax.f32 %v1010_v62, 0.0  ;;  %v1477_v2 = vmax.f32 %v1445_v27, 0.0  ;;  %v1011_v7 = vmul.f32 %v1744_v63, %v2245_v28  ;;  %v1446_v8 = vmul.f32 %v1856_v0, %v2245_v28 }
 0x16c   :  { %1074 = vst [vmem:[#allocation7 + $0x38] sm:$0xff] %v1042_v1  ;;  %1509 = vst [vmem:[#allocation7 + $0x40] sm:$0xff] %v1477_v2  ;;  %v1043_v11 = vmax.f32 %v1011_v7, 0.0  ;;  %v1478_v12 = vmax.f32 %v1446_v8, 0.0  ;;  %v1745_v13 = vpop.f32.mrb[40].mxu1  ;;  %v1857_v14 = vpop.f32.mrb[40].mxu0 }
 0x16d   :  { %v1746_v15 = vpop.f32.mrb[41].mxu1  ;;  %v1858_v16 = vpop.f32.mrb[41].mxu0 }
 0x16e   :  { %1075 = vst [vmem:[#allocation7 + $0x50] sm:$0xff] %v1043_v11  ;;  %1510 = vst [vmem:[#allocation7 + $0x58] sm:$0xff] %v1478_v12  ;;  %v1747_v19 = vadd.f32 %v1746_v15, %v1745_v13  ;;  %v1859_v22 = vadd.f32 %v1858_v16, %v1857_v14  ;;  %v1748_v20 = vpop.f32.mrb[42].mxu1  ;;  %v1860_v23 = vpop.f32.mrb[42].mxu0 }
 0x16f   :  { %v1749_v24 = vpop.f32.mrb[43].mxu1  ;;  %v1861_v25 = vpop.f32.mrb[43].mxu0 }
 0x170   :  { %v1012_v26 = vmul.f32 %v1747_v19, %v2247_v35  ;;  %v1447_v28 = vmul.f32 %v1859_v22, %v2247_v35  ;;  %v1750_v29 = vadd.f32 %v1749_v24, %v1748_v20  ;;  %v1862_v30 = vadd.f32 %v1861_v25, %v1860_v23 }
 0x172   :  { %v1044_v37 = vmax.f32 %v1012_v26, 0.0  ;;  %v1479_v38 = vmax.f32 %v1447_v28, 0.0  ;;  %v1013_v51 = vmul.f32 %v1750_v29, %v2249_v36  ;;  %v1448_v52 = vmul.f32 %v1862_v30, %v2249_v36 }
 0x174   :  { %1076 = vst [vmem:[#allocation7 + $0x68] sm:$0xff] %v1044_v37  ;;  %1511 = vst [vmem:[#allocation7 + $0x70] sm:$0xff] %v1479_v38  ;;  %v1045_v55 = vmax.f32 %v1013_v51, 0.0  ;;  %v1480_v56 = vmax.f32 %v1448_v52, 0.0  ;;  %v1751_v57 = vpop.f32.mrb[44].mxu1  ;;  %v1863_v21 = vpop.f32.mrb[44].mxu0 }
 0x175   :  { %v1752_v58 = vpop.f32.mrb[45].mxu1  ;;  %v1864_v59 = vpop.f32.mrb[45].mxu0 }
 0x176   :  { %1077 = vst [vmem:[#allocation7 + $0x80] sm:$0xff] %v1045_v55  ;;  %1512 = vst [vmem:[#allocation7 + $0x88] sm:$0xff] %v1480_v56  ;;  %v1753_v60 = vadd.f32 %v1752_v58, %v1751_v57  ;;  %v1865_v35 = vadd.f32 %v1864_v59, %v1863_v21  ;;  %v1754_v61 = vpop.f32.mrb[46].mxu1  ;;  %v1866_v62 = vpop.f32.mrb[46].mxu0 }
 0x177   :  { %v1755_v27 = vpop.f32.mrb[47].mxu1  ;;  %v1867_v63 = vpop.f32.mrb[47].mxu0 }
 0x178   :  { %v1014_v0 = vmul.f32 %v1753_v60, %v2251_v39  ;;  %v1449_v36 = vmul.f32 %v1865_v35, %v2251_v39  ;;  %v1756_v1 = vadd.f32 %v1755_v27, %v1754_v61  ;;  %v1868_v2 = vadd.f32 %v1867_v63, %v1866_v62 }
 0x17a   :  { %v1046_v7 = vmax.f32 %v1014_v0, 0.0  ;;  %v1481_v8 = vmax.f32 %v1449_v36, 0.0  ;;  %v1015_v11 = vmul.f32 %v1756_v1, %v2253_v40  ;;  %v1450_v12 = vmul.f32 %v1868_v2, %v2253_v40 }
 0x17c   :  { %1078 = vst [vmem:[#allocation7 + $0x98] sm:$0xff] %v1046_v7  ;;  %1513 = vst [vmem:[#allocation7 + $0xa0] sm:$0xff] %v1481_v8  ;;  %v1047_v13 = vmax.f32 %v1015_v11, 0.0  ;;  %v1482_v14 = vmax.f32 %v1450_v12, 0.0  ;;  %v1757_v15 = vpop.f32.mrb[48].mxu1  ;;  %v1869_v16 = vpop.f32.mrb[48].mxu0 }
 0x17d   :  { %v1758_v19 = vpop.f32.mrb[49].mxu1  ;;  %v1870_v22 = vpop.f32.mrb[49].mxu0 }
 0x17e   :  { %1079 = vst [vmem:[#allocation7 + $0xb0] sm:$0xff] %v1047_v13  ;;  %1514 = vst [vmem:[#allocation7 + $0xb8] sm:$0xff] %v1482_v14  ;;  %v1759_v20 = vadd.f32 %v1758_v19, %v1757_v15  ;;  %v1871_v39 = vadd.f32 %v1870_v22, %v1869_v16  ;;  %v1760_v23 = vpop.f32.mrb[50].mxu1  ;;  %v1872_v24 = vpop.f32.mrb[50].mxu0 }
 0x17f   :  { %v1761_v25 = vpop.f32.mrb[51].mxu1  ;;  %v1873_v26 = vpop.f32.mrb[51].mxu0 }
 0x180   :  { %v1016_v28 = vmul.f32 %v1759_v20, %v2255_v41  ;;  %v1451_v40 = vmul.f32 %v1871_v39, %v2255_v41  ;;  %v1762_v29 = vadd.f32 %v1761_v25, %v1760_v23  ;;  %v1874_v30 = vadd.f32 %v1873_v26, %v1872_v24 }
 0x182   :  { %v1048_v37 = vmax.f32 %v1016_v28, 0.0  ;;  %v1483_v38 = vmax.f32 %v1451_v40, 0.0  ;;  %v1017_v51 = vmul.f32 %v1762_v29, %v2257_v42  ;;  %v1452_v52 = vmul.f32 %v1874_v30, %v2257_v42 }
 0x184   :  { %1080 = vst [vmem:[#allocation7 + $0xc8] sm:$0xff] %v1048_v37  ;;  %1515 = vst [vmem:[#allocation7 + $0xd0] sm:$0xff] %v1483_v38  ;;  %v1049_v55 = vmax.f32 %v1017_v51, 0.0  ;;  %v1484_v56 = vmax.f32 %v1452_v52, 0.0  ;;  %v1763_v57 = vpop.f32.mrb[52].mxu1  ;;  %v1875_v21 = vpop.f32.mrb[52].mxu0 }
 0x185   :  { %v1764_v58 = vpop.f32.mrb[53].mxu1  ;;  %v1876_v59 = vpop.f32.mrb[53].mxu0 }
 0x186   :  { %1081 = vst [vmem:[#allocation7 + $0xe0] sm:$0xff] %v1049_v55  ;;  %1516 = vst [vmem:[#allocation7 + $0xe8] sm:$0xff] %v1484_v56  ;;  %v1765_v60 = vadd.f32 %v1764_v58, %v1763_v57  ;;  %v1877_v41 = vadd.f32 %v1876_v59, %v1875_v21  ;;  %v1766_v35 = vpop.f32.mrb[54].mxu1  ;;  %v1878_v61 = vpop.f32.mrb[54].mxu0 }
 0x187   :  { %v1767_v62 = vpop.f32.mrb[55].mxu1  ;;  %v1879_v27 = vpop.f32.mrb[55].mxu0 }
 0x188   :  { %v1018_v63 = vmul.f32 %v1765_v60, %v2259_v43  ;;  %v1453_v42 = vmul.f32 %v1877_v41, %v2259_v43  ;;  %v1768_v0 = vadd.f32 %v1767_v62, %v1766_v35  ;;  %v1880_v36 = vadd.f32 %v1879_v27, %v1878_v61 }
 0x18a   :  { %v1050_v1 = vmax.f32 %v1018_v63, 0.0  ;;  %v1485_v2 = vmax.f32 %v1453_v42, 0.0  ;;  %v1019_v7 = vmul.f32 %v1768_v0, %v2261_v44  ;;  %v1454_v8 = vmul.f32 %v1880_v36, %v2261_v44 }
 0x18c   :  { %1082 = vst [vmem:[#allocation7 + $0xf8] sm:$0xff] %v1050_v1  ;;  %1517 = vst [vmem:[#allocation7 + $0x100] sm:$0xff] %v1485_v2  ;;  %v1051_v11 = vmax.f32 %v1019_v7, 0.0  ;;  %v1486_v12 = vmax.f32 %v1454_v8, 0.0  ;;  %v1769_v13 = vpop.f32.mrb[56].mxu1  ;;  %v1881_v14 = vpop.f32.mrb[56].mxu0 }
 0x18d   :  { %v1770_v15 = vpop.f32.mrb[57].mxu1  ;;  %v1882_v16 = vpop.f32.mrb[57].mxu0 }
 0x18e   :  { %1083 = vst [vmem:[#allocation7 + $0x110] sm:$0xff] %v1051_v11  ;;  %1518 = vst [vmem:[#allocation7 + $0x118] sm:$0xff] %v1486_v12  ;;  %v1771_v19 = vadd.f32 %v1770_v15, %v1769_v13  ;;  %v1883_v43 = vadd.f32 %v1882_v16, %v1881_v14  ;;  %v1772_v22 = vpop.f32.mrb[58].mxu1  ;;  %v1884_v20 = vpop.f32.mrb[58].mxu0 }
 0x18f   :  { %v1773_v39 = vpop.f32.mrb[59].mxu1  ;;  %v1885_v23 = vpop.f32.mrb[59].mxu0 }
 0x190   :  { %v1020_v24 = vmul.f32 %v1771_v19, %v2263_v45  ;;  %v1455_v44 = vmul.f32 %v1883_v43, %v2263_v45  ;;  %v1774_v25 = vadd.f32 %v1773_v39, %v1772_v22  ;;  %v1886_v26 = vadd.f32 %v1885_v23, %v1884_v20 }
 0x192   :  { %v1052_v28 = vmax.f32 %v1020_v24, 0.0  ;;  %v1487_v40 = vmax.f32 %v1455_v44, 0.0  ;;  %v1021_v29 = vmul.f32 %v1774_v25, %v2265_v46  ;;  %v1456_v30 = vmul.f32 %v1886_v26, %v2265_v46 }
 0x194   :  { %1084 = vst [vmem:[#allocation7 + $0x128] sm:$0xff] %v1052_v28  ;;  %1519 = vst [vmem:[#allocation7 + $0x130] sm:$0xff] %v1487_v40  ;;  %v1053_v37 = vmax.f32 %v1021_v29, 0.0  ;;  %v1488_v38 = vmax.f32 %v1456_v30, 0.0  ;;  %v1775_v51 = vpop.f32.mrb[60].mxu1  ;;  %v1887_v52 = vpop.f32.mrb[60].mxu0 }
 0x195   :  { %v1776_v55 = vpop.f32.mrb[61].mxu1  ;;  %v1888_v56 = vpop.f32.mrb[61].mxu0 }
 0x196   :  { %1085 = vst [vmem:[#allocation7 + $0x140] sm:$0xff] %v1053_v37  ;;  %1520 = vst [vmem:[#allocation7 + $0x148] sm:$0xff] %v1488_v38  ;;  %v1777_v57 = vadd.f32 %v1776_v55, %v1775_v51  ;;  %v1889_v45 = vadd.f32 %v1888_v56, %v1887_v52  ;;  %v1778_v21 = vpop.f32.mrb[62].mxu1  ;;  %v1890_v58 = vpop.f32.mrb[62].mxu0 }
 0x197   :  { %v1779_v59 = vpop.f32.mrb[63].mxu1  ;;  %v1891_v60 = vpop.f32.mrb[63].mxu0 }
 0x198   :  { %v1022_v41 = vmul.f32 %v1777_v57, %v2267_v47  ;;  %v1457_v46 = vmul.f32 %v1889_v45, %v2267_v47  ;;  %v1780_v35 = vadd.f32 %v1779_v59, %v1778_v21  ;;  %v1892_v61 = vadd.f32 %v1891_v60, %v1890_v58 }
 0x19a   :  { %v1054_v62 = vmax.f32 %v1022_v41, 0.0  ;;  %v1489_v27 = vmax.f32 %v1457_v46, 0.0  ;;  %v1023_v63 = vmul.f32 %v1780_v35, %v2269_v48  ;;  %v1458_v42 = vmul.f32 %v1892_v61, %v2269_v48 }
 0x19c   :  { %1086 = vst [vmem:[#allocation7 + $0x158] sm:$0xff] %v1054_v62  ;;  %1521 = vst [vmem:[#allocation7 + $0x160] sm:$0xff] %v1489_v27  ;;  %v1055_v0 = vmax.f32 %v1023_v63, 0.0  ;;  %v1490_v36 = vmax.f32 %v1458_v42, 0.0  ;;  %v1781_v1 = vpop.f32.mrb[64].mxu1  ;;  %v1893_v2 = vpop.f32.mrb[64].mxu0 }
 0x19d   :  { %v1782_v7 = vpop.f32.mrb[65].mxu1  ;;  %v1894_v8 = vpop.f32.mrb[65].mxu0 }
 0x19e   :  { %1087 = vst [vmem:[#allocation7 + $0x170] sm:$0xff] %v1055_v0  ;;  %1522 = vst [vmem:[#allocation7 + $0x178] sm:$0xff] %v1490_v36  ;;  %v1783_v11 = vadd.f32 %v1782_v7, %v1781_v1  ;;  %v1895_v47 = vadd.f32 %v1894_v8, %v1893_v2  ;;  %v1784_v12 = vpop.f32.mrb[66].mxu1  ;;  %v1896_v13 = vpop.f32.mrb[66].mxu0 }
 0x19f   :  { %v1785_v14 = vpop.f32.mrb[67].mxu1  ;;  %v1897_v15 = vpop.f32.mrb[67].mxu0 }
 0x1a0   :  { %v1024_v16 = vmul.f32 %v1783_v11, %v2271_v49  ;;  %v1459_v48 = vmul.f32 %v1895_v47, %v2271_v49  ;;  %v1786_v19 = vadd.f32 %v1785_v14, %v1784_v12  ;;  %v1898_v43 = vadd.f32 %v1897_v15, %v1896_v13 }
 0x1a2   :  { %v1056_v22 = vmax.f32 %v1024_v16, 0.0  ;;  %v1491_v20 = vmax.f32 %v1459_v48, 0.0  ;;  %v1025_v39 = vmul.f32 %v1786_v19, %v2273_v50  ;;  %v1460_v23 = vmul.f32 %v1898_v43, %v2273_v50 }
 0x1a4   :  { %1088 = vst [vmem:[#allocation7 + $0x188] sm:$0xff] %v1056_v22  ;;  %1523 = vst [vmem:[#allocation7 + $0x190] sm:$0xff] %v1491_v20  ;;  %v1057_v24 = vmax.f32 %v1025_v39, 0.0  ;;  %v1492_v44 = vmax.f32 %v1460_v23, 0.0  ;;  %v1787_v25 = vpop.f32.mrb[68].mxu1  ;;  %v1899_v26 = vpop.f32.mrb[68].mxu0 }
 0x1a5   :  { %v1788_v28 = vpop.f32.mrb[69].mxu1  ;;  %v1900_v40 = vpop.f32.mrb[69].mxu0 }
 0x1a6   :  { %1089 = vst [vmem:[#allocation7 + $0x1a0] sm:$0xff] %v1057_v24  ;;  %1524 = vst [vmem:[#allocation7 + $0x1a8] sm:$0xff] %v1492_v44  ;;  %v1789_v29 = vadd.f32 %v1788_v28, %v1787_v25  ;;  %v1901_v49 = vadd.f32 %v1900_v40, %v1899_v26  ;;  %v1790_v30 = vpop.f32.mrb[70].mxu1  ;;  %v1902_v37 = vpop.f32.mrb[70].mxu0 }
 0x1a7   :  { %v1791_v38 = vpop.f32.mrb[71].mxu1  ;;  %v1903_v51 = vpop.f32.mrb[71].mxu0 }
 0x1a8   :  { %v1026_v52 = vmul.f32 %v1789_v29, %v2279_v5  ;;  %v1461_v50 = vmul.f32 %v1901_v49, %v2279_v5  ;;  %v1792_v55 = vadd.f32 %v1791_v38, %v1790_v30  ;;  %v1904_v56 = vadd.f32 %v1903_v51, %v1902_v37 }
 0x1aa   :  { %v1058_v57 = vmax.f32 %v1026_v52, 0.0  ;;  %v1493_v45 = vmax.f32 %v1461_v50, 0.0  ;;  %v1027_v21 = vmul.f32 %v1792_v55, %v2281_v6  ;;  %v1462_v58 = vmul.f32 %v1904_v56, %v2281_v6 }
 0x1ac   :  { %1090 = vst [vmem:[#allocation7 + $0x1b8] sm:$0xff] %v1058_v57  ;;  %1525 = vst [vmem:[#allocation7 + $0x1c0] sm:$0xff] %v1493_v45  ;;  %v1059_v59 = vmax.f32 %v1027_v21, 0.0  ;;  %v1494_v60 = vmax.f32 %v1462_v58, 0.0  ;;  %v1793_v41 = vpop.f32.mrb[72].mxu1  ;;  %v1905_v46 = vpop.f32.mrb[72].mxu0 }
 0x1ad   :  { %v1794_v35 = vpop.f32.mrb[73].mxu1  ;;  %v1906_v61 = vpop.f32.mrb[73].mxu0 }
 0x1ae   :  { %1091 = vst [vmem:[#allocation7 + $0x1d0] sm:$0xff] %v1059_v59  ;;  %1526 = vst [vmem:[#allocation7 + $0x1d8] sm:$0xff] %v1494_v60  ;;  %v1795_v62 = vadd.f32 %v1794_v35, %v1793_v41  ;;  %v1907_v5 = vadd.f32 %v1906_v61, %v1905_v46  ;;  %v1796_v27 = vpop.f32.mrb[74].mxu1  ;;  %v1908_v63 = vpop.f32.mrb[74].mxu0 }
 0x1af   :  { %v1797_v42 = vpop.f32.mrb[75].mxu1  ;;  %v1909_v0 = vpop.f32.mrb[75].mxu0 }
 0x1b0   :  { %v1028_v36 = vmul.f32 %v1795_v62, %v2287_v31  ;;  %v1463_v6 = vmul.f32 %v1907_v5, %v2287_v31  ;;  %v1798_v1 = vadd.f32 %v1797_v42, %v1796_v27  ;;  %v1910_v2 = vadd.f32 %v1909_v0, %v1908_v63 }
 0x1b2   :  { %v1060_v7 = vmax.f32 %v1028_v36, 0.0  ;;  %v1495_v8 = vmax.f32 %v1463_v6, 0.0  ;;  %v1029_v11 = vmul.f32 %v1798_v1, %v2289_v32  ;;  %v1464_v47 = vmul.f32 %v1910_v2, %v2289_v32 }
 0x1b4   :  { %1092 = vst [vmem:[#allocation7 + $0x1e8] sm:$0xff] %v1060_v7  ;;  %1527 = vst [vmem:[#allocation7 + $0x1f0] sm:$0xff] %v1495_v8  ;;  %v1061_v12 = vmax.f32 %v1029_v11, 0.0  ;;  %v1496_v13 = vmax.f32 %v1464_v47, 0.0  ;;  %v1799_v14 = vpop.f32.mrb[76].mxu1  ;;  %v1911_v15 = vpop.f32.mrb[76].mxu0 }
 0x1b5   :  { %v1800_v16 = vpop.f32.mrb[77].mxu1  ;;  %v1912_v48 = vpop.f32.mrb[77].mxu0 }
 0x1b6   :  { %1093 = vst [vmem:[#allocation7 + $0x200] sm:$0xff] %v1061_v12  ;;  %1528 = vst [vmem:[#allocation7 + $0x208] sm:$0xff] %v1496_v13  ;;  %v1801_v19 = vadd.f32 %v1800_v16, %v1799_v14  ;;  %v1913_v31 = vadd.f32 %v1912_v48, %v1911_v15  ;;  %v1802_v43 = vpop.f32.mrb[78].mxu1  ;;  %v1914_v22 = vpop.f32.mrb[78].mxu0 }
 0x1b7   :  { %v1803_v20 = vpop.f32.mrb[79].mxu1  ;;  %v1915_v39 = vpop.f32.mrb[79].mxu0 }
 0x1b8   :  { %v1030_v23 = vmul.f32 %v1801_v19, %v2295_v3  ;;  %v1465_v32 = vmul.f32 %v1913_v31, %v2295_v3  ;;  %v1804_v24 = vadd.f32 %v1803_v20, %v1802_v43  ;;  %v1916_v44 = vadd.f32 %v1915_v39, %v1914_v22 }
 0x1ba   :  { %v1062_v25 = vmax.f32 %v1030_v23, 0.0  ;;  %v1497_v26 = vmax.f32 %v1465_v32, 0.0  ;;  %v1031_v28 = vmul.f32 %v1804_v24, %v2297_v4  ;;  %v1466_v40 = vmul.f32 %v1916_v44, %v2297_v4 }
 0x1bc   :  { %1094 = vst [vmem:[#allocation7 + $0x218] sm:$0xff] %v1062_v25  ;;  %1529 = vst [vmem:[#allocation7 + $0x220] sm:$0xff] %v1497_v26  ;;  %v1063_v29 = vmax.f32 %v1031_v28, 0.0  ;;  %v1498_v49 = vmax.f32 %v1466_v40, 0.0  ;;  %v1805_v30 = vpop.f32.mrb[80].mxu1  ;;  %v1917_v37 = vpop.f32.mrb[80].mxu0 }
 0x1bd   :  { %v1806_v38 = vpop.f32.mrb[81].mxu1  ;;  %v1918_v51 = vpop.f32.mrb[81].mxu0 }
 0x1be   :  { %1095 = vst [vmem:[#allocation7 + $0x230] sm:$0xff] %v1063_v29  ;;  %1530 = vst [vmem:[#allocation7 + $0x238] sm:$0xff] %v1498_v49  ;;  %v1807_v52 = vadd.f32 %v1806_v38, %v1805_v30  ;;  %v1919_v3 = vadd.f32 %v1918_v51, %v1917_v37  ;;  %v1808_v50 = vpop.f32.mrb[82].mxu1  ;;  %v1920_v55 = vpop.f32.mrb[82].mxu0 }
 0x1bf   :  { %v1809_v56 = vpop.f32.mrb[83].mxu1  ;;  %v1921_v57 = vpop.f32.mrb[83].mxu0 }
 0x1c0   :  { %v1032_v45 = vmul.f32 %v1807_v52, %v2303_v33  ;;  %v1467_v4 = vmul.f32 %v1919_v3, %v2303_v33  ;;  %v1810_v21 = vadd.f32 %v1809_v56, %v1808_v50  ;;  %v1922_v58 = vadd.f32 %v1921_v57, %v1920_v55 }
 0x1c2   :  { %v1064_v59 = vmax.f32 %v1032_v45, 0.0  ;;  %v1499_v60 = vmax.f32 %v1467_v4, 0.0  ;;  %v1033_v41 = vmul.f32 %v1810_v21, %v2305_v34  ;;  %v1468_v46 = vmul.f32 %v1922_v58, %v2305_v34 }
 0x1c4   :  { %1096 = vst [vmem:[#allocation7 + $0x248] sm:$0xff] %v1064_v59  ;;  %1531 = vst [vmem:[#allocation7 + $0x250] sm:$0xff] %v1499_v60  ;;  %v1065_v35 = vmax.f32 %v1033_v41, 0.0  ;;  %v1500_v61 = vmax.f32 %v1468_v46, 0.0  ;;  %v1811_v62 = vpop.f32.mrb[84].mxu1  ;;  %v1923_v5 = vpop.f32.mrb[84].mxu0 }
 0x1c5   :  { %v1812_v27 = vpop.f32.mrb[85].mxu1  ;;  %v1924_v63 = vpop.f32.mrb[85].mxu0 }
 0x1c6   :  { %1097 = vst [vmem:[#allocation7 + $0x260] sm:$0xff] %v1065_v35  ;;  %1532 = vst [vmem:[#allocation7 + $0x268] sm:$0xff] %v1500_v61  ;;  %v1813_v42 = vadd.f32 %v1812_v27, %v1811_v62  ;;  %v1925_v33 = vadd.f32 %v1924_v63, %v1923_v5  ;;  %v1814_v0 = vpop.f32.mrb[86].mxu1  ;;  %v1926_v36 = vpop.f32.mrb[86].mxu0 }
 0x1c7   :  { %v1815_v6 = vpop.f32.mrb[87].mxu1  ;;  %v1927_v1 = vpop.f32.mrb[87].mxu0 }
 0x1c8   :  { %v1034_v2 = vmul.f32 %v1813_v42, %v2311_v9  ;;  %v1469_v34 = vmul.f32 %v1925_v33, %v2311_v9  ;;  %v1816_v7 = vadd.f32 %v1815_v6, %v1814_v0  ;;  %v1928_v8 = vadd.f32 %v1927_v1, %v1926_v36 }
 0x1ca   :  { %v1066_v11 = vmax.f32 %v1034_v2, 0.0  ;;  %v1501_v47 = vmax.f32 %v1469_v34, 0.0  ;;  %v1035_v12 = vmul.f32 %v1816_v7, %v2313_v10  ;;  %v1470_v13 = vmul.f32 %v1928_v8, %v2313_v10 }
 0x1cc   :  { %1098 = vst [vmem:[#allocation7 + $0x278] sm:$0xff] %v1066_v11  ;;  %1533 = vst [vmem:[#allocation7 + $0x280] sm:$0xff] %v1501_v47  ;;  %v1067_v14 = vmax.f32 %v1035_v12, 0.0  ;;  %v1502_v15 = vmax.f32 %v1470_v13, 0.0  ;;  %v1817_v16 = vpop.f32.mrb[88].mxu1  ;;  %v1929_v48 = vpop.f32.mrb[88].mxu0 }
 0x1cd   :  { %v1818_v19 = vpop.f32.mrb[89].mxu1  ;;  %v1930_v31 = vpop.f32.mrb[89].mxu0 }
 0x1ce   :  { %1099 = vst [vmem:[#allocation7 + $0x290] sm:$0xff] %v1067_v14  ;;  %1534 = vst [vmem:[#allocation7 + $0x298] sm:$0xff] %v1502_v15  ;;  %v1819_v43 = vadd.f32 %v1818_v19, %v1817_v16  ;;  %v1931_v9 = vadd.f32 %v1930_v31, %v1929_v48  ;;  %v1820_v22 = vpop.f32.mrb[90].mxu1  ;;  %v1932_v20 = vpop.f32.mrb[90].mxu0 }
 0x1cf   :  { %v1821_v39 = vpop.f32.mrb[91].mxu1  ;;  %v1933_v23 = vpop.f32.mrb[91].mxu0 }
 0x1d0   :  { %v1036_v32 = vmul.f32 %v1819_v43, %v2319_v53  ;;  %v1471_v10 = vmul.f32 %v1931_v9, %v2319_v53  ;;  %v1822_v24 = vadd.f32 %v1821_v39, %v1820_v22  ;;  %v1934_v44 = vadd.f32 %v1933_v23, %v1932_v20 }
 0x1d2   :  { %v1068_v25 = vmax.f32 %v1036_v32, 0.0  ;;  %v1503_v26 = vmax.f32 %v1471_v10, 0.0  ;;  %v1037_v28 = vmul.f32 %v1822_v24, %v2321_v54  ;;  %v1472_v40 = vmul.f32 %v1934_v44, %v2321_v54 }
 0x1d4   :  { %1100 = vst [vmem:[#allocation7 + $0x2a8] sm:$0xff] %v1068_v25  ;;  %1535 = vst [vmem:[#allocation7 + $0x2b0] sm:$0xff] %v1503_v26  ;;  %v1069_v29 = vmax.f32 %v1037_v28, 0.0  ;;  %v1504_v49 = vmax.f32 %v1472_v40, 0.0  ;;  %v1823_v30 = vpop.f32.mrb[92].mxu1  ;;  %v1935_v37 = vpop.f32.mrb[92].mxu0 }
 0x1d5   :  { %v1824_v38 = vpop.f32.mrb[93].mxu1  ;;  %v1936_v51 = vpop.f32.mrb[93].mxu0 }
 0x1d6   :  { %1101 = vst [vmem:[#allocation7 + $0x2c0] sm:$0xff] %v1069_v29  ;;  %1536 = vst [vmem:[#allocation7 + $0x2c8] sm:$0xff] %v1504_v49  ;;  %v1825_v52 = vadd.f32 %v1824_v38, %v1823_v30  ;;  %v1937_v53 = vadd.f32 %v1936_v51, %v1935_v37  ;;  %v1826_v3 = vpop.f32.mrb[94].mxu1  ;;  %v1938_v50 = vpop.f32.mrb[94].mxu0 }
 0x1d7   :  { %v1827_v55 = vpop.f32.mrb[95].mxu1  ;;  %v1939_v56 = vpop.f32.mrb[95].mxu0 }
 0x1d8   :  { %v1038_v57 = vmul.f32 %v1825_v52, %v2327_v17  ;;  %v1473_v54 = vmul.f32 %v1937_v53, %v2327_v17  ;;  %v1828_v45 = vadd.f32 %v1827_v55, %v1826_v3  ;;  %v1940_v4 = vadd.f32 %v1939_v56, %v1938_v50 }
 0x1da   :  { %v1070_v21 = vmax.f32 %v1038_v57, 0.0  ;;  %v1505_v58 = vmax.f32 %v1473_v54, 0.0  ;;  %v1039_v59 = vmul.f32 %v1828_v45, %v2329_v18  ;;  %v1474_v60 = vmul.f32 %v1940_v4, %v2329_v18 }
 0x1dc   :  { %1102 = vst [vmem:[#allocation7 + $0x2d8] sm:$0xff] %v1070_v21  ;;  %1537 = vst [vmem:[#allocation7 + $0x2e0] sm:$0xff] %v1505_v58  ;;  %v1071_v41 = vmax.f32 %v1039_v59, 0.0  ;;  %v1506_v46 = vmax.f32 %v1474_v60, 0.0 }
 0x1de   :  { %1103 = vst [vmem:[#allocation7 + $0x2f0] sm:$0xff] %v1071_v41  ;;  %1538 = vst [vmem:[#allocation7 + $0x2f8] sm:$0xff] %v1506_v46 }
 0x1df   :  { %2072 = shalt.err (!%p2069_p6)
}
 0x1e0   :  { %s2073_s21 = scalar_lea.hbm %s2414_s3, 12288 }
 0x1e1   :  { %p2074_p7 = scmp.ne.s32.totalorder %s2414_s3, %s2073_s21  ;;  %p2077_p8 = scmp.lt.u32.totalorder %s2073_s21, %s2414_s3 }
 0x1e3   :  { %p2079_p9 = pnand %p2077_p8, %p2074_p7 }
 0x1e5   :  { %2082 = shalt.err (!%p2079_p9)
}
 0x1e6   :  { %s2097_s26 = smov 384   ;;  %s2098_s27 = smov 24  }
 0x1e7   :  { %1550 = dma.vmem_to_hbm [thread:$0]  %s1545_s17, 12288, %s2414_s3, [#allocation4], %s2097_s26, %s2097_s26, %s2098_s27  }
 0x1e8   :  { %2087 = dma.done.wait [#allocation4], 12288  }
 0x1e9   :  { %2088 = vsyncadd [#allocation4], 4294955008 }
 0x1ea   :  { %1554 = vsyncpa [#allocation3], 1 }
 0x1eb   :  { %1555 = vsyncpa [#allocation6], 1 }
 0x1ec   :  { %1556 = vsyncpa [#allocation4], 1 }

</bundles_post_ra>
